<compile_context>
chip_gen: v7x
topology: tpu7x:2x2x1
jax: 0.10.0
libtpu: 0.0.40
codegen_flags: <defaults>
</compile_context>

<pallas_src>
import functools

import numpy as np
import jax
import jax.numpy as jnp
from jax import lax
from jax.experimental import pallas as pl
from jax.experimental.pallas import tpu as pltpu

PI = 3.14159265359
_LANE = 128
# Tile cap chosen so the in-kernel (nsamps, TILE_P) f32 weight temporary stays small
# enough for v7x (64 MiB VMEM per TensorCore); also fine on v5e/v6e.
_DEFAULT_TILE_P = 512


def _round_up(x, m):
    return (x + m - 1) // m * m


# ---------------------------------------------------------------------------
# Pallas kernel: one grid step == one (pixel tile, rx element) pair.
#   tx_ref : (A, R, TILE_P)  rows = [tx delay(samples), tx apod, (tx cos, tx sin)]
#   rx_ref : (R, TILE_P)     rows = [rx delay(samples), rx apod, (rx cos, rx sin)]
#   iq_ref : (A, 2, nsamps)  lane-dense I/Q traces of this element, all angles
# ---------------------------------------------------------------------------
def _das_pw_kernel(tx_ref, rx_ref, iq_ref,
                   idas_ref, qdas_ref, chi_ref, chq_ref, apod_ref,
                   *, nangles, nsamps, use_demod):
    j = pl.program_id(1)                 # rx element (inner, "arbitrary" axis)

    # idas/qdas blocks are indexed by the pixel tile only -> resident across the
    # whole inner element axis; zero them on the first element of every tile.
    @pl.when(j == 0)
    def _init():
        idas_ref[...] = jnp.zeros_like(idas_ref)
        qdas_ref[...] = jnp.zeros_like(qdas_ref)

    rx = rx_ref[...]                     # (R, TILE_P)
    rxd = rx[0:1]                        # (1, TILE_P)
    rxa = rx[1:2]
    tile_p = rx.shape[-1]

    # Hoisted out of the angle loop: sample-index iota (pixels on the lane axis).
    samp = lax.broadcasted_iota(jnp.int32, (nsamps, tile_p), 0).astype(jnp.float32)

    def body(a, carry):
        del carry
        tx = tx_ref[a]                   # (R, TILE_P), dynamic leading index
        delays = tx[0:1] + rxd           # fractional sample index, (1, TILE_P)
        apods = tx[1:2] * rxa

        # Linear-interp weights as a hat function:
        #   w[s, p] = max(0, 1 - |s - delays[p]|)
        # == torch.grid_sample(mode='bilinear', padding_mode='zeros',
        #                      align_corners=False) at sample index `delays`
        # (out-of-range samples get zero weight for free).  The MAC + sample-axis
        # reduction runs on the MXU as a single (2,nsamps)x(nsamps,TILE_P) dot.
        # TODO(synk): replace with a 2-tap in-VMEM vector gather (O(TILE_P) instead of
        # O(nsamps*TILE_P)) once Mosaic's dynamic-gather lowering covers long gathers.
        w = jnp.maximum(1.0 - jnp.abs(samp - delays), 0.0)        # (nsamps, TILE_P)
        foc = jnp.dot(iq_ref[a], w, preferred_element_type=jnp.float32)  # (2, TILE_P)
        ifoc = foc[0:1]
        qfoc = foc[1:2]

        if use_demod:
            # Precomputed phasors combined with the angle-sum identity:
            # theta = theta_tx(angle,pixel) + theta_rx(element,pixel)
            ct = tx[2:3] * rx[2:3] - tx[3:4] * rx[3:4]
            st = tx[3:4] * rx[2:3] + tx[2:3] * rx[3:4]
            ifoc, qfoc = ifoc * ct - qfoc * st, qfoc * ct + ifoc * st

        iap = ifoc * apods
        qap = qfoc * apods
        idas_ref[...] += iap             # accumulate over (angle, element)
        qdas_ref[...] += qap
        return iap, qap, apods

    zero = jnp.zeros((1, tile_p), jnp.float32)
    iap, qap, apods = lax.fori_loop(0, nangles, body, (zero, zero, zero),
                                    unroll=nangles <= 8)

    # Only the last tx angle survives in ch1/apod1 (the PyTorch reference overwrites
    # ch1[:, :, r] every angle); store once, lane-dense, after the loop.
    chi_ref[...] = iap
    chq_ref[...] = qap
    apod_ref[...] = apods


# ---------------------------------------------------------------------------
# Plain-JAX glue: delay / apodization tables (the "setup" loops of forward()).
# ---------------------------------------------------------------------------
def _delay_apod_tables(grid, angles, ele_pos, time_zero, fs, c,
                       ang_list, ele_list, fnum=1.75, min_width=1e-3):
    gx = grid[:, 0]
    gz = grid[:, 2]
    xlims = (ele_pos[0, 0], ele_pos[-1, 0])

    # delay_plane + time_zero*c ; apod_plane
    ang = angles[ang_list]                                     # (A,)
    tz = time_zero[ang_list]                                   # (A,)
    txdel = gx[None, :] * jnp.sin(ang)[:, None] + gz[None, :] * jnp.cos(ang)[:, None]
    txdel = txdel + (tz * c)[:, None]
    x_proj = gx[None, :] - gz[None, :] * jnp.tan(ang)[:, None]
    txapo = ((x_proj >= xlims[0] * 1.2) & (x_proj <= xlims[1] * 1.2)).astype(jnp.float32)

    # delay_focus ; apod_focus (module ignores rxfnum and uses default fnum=1.75)
    ep = ele_pos[ele_list]                                     # (E, 3)
    diff = grid[None, :, :] - ep[:, None, :]                   # (E, npix, 3)
    rxdel = jnp.sqrt(jnp.sum(diff * diff, axis=-1))            # (E, npix)
    vx = diff[:, :, 0]
    vz = diff[:, :, 2]
    ex = ep[:, 0:1]                                            # (E, 1)
    mask = jnp.abs(vz / vx) > fnum
    mask = mask | (jnp.abs(vx) <= min_width)
    mask = mask | ((vx >= min_width) & (gx[None, :] <= ex))
    mask = mask | ((vx <= -min_width) & (gx[None, :] >= ex))
    rxapo = mask.astype(jnp.float32)

    txdel = txdel * (fs / c)     # -> fractional sample index
    rxdel = rxdel * (fs / c)
    return txdel, txapo, rxdel, rxapo


# ---------------------------------------------------------------------------
# Wrapper == DAS_PW.forward
# ---------------------------------------------------------------------------
def das_pw_forward(idata, qdata, grid_3d, angles, ele_pos, time_zero,
                   fs, c, fdemod, ang_list=None, ele_list=None, tile_p=None):
    out_sp = grid_3d.shape[:-1]
    grid = grid_3d.reshape(-1, 3).astype(jnp.float32)
    npix = grid.shape[0]
    nsamps = idata.shape[-1]
    use_demod = float(fdemod) != 0.0

    if ang_list is None:
        ang_list = jnp.arange(angles.shape[0], dtype=jnp.int32)
    else:
        ang_list = jnp.asarray(ang_list, dtype=jnp.int32)
    if ele_list is None:
        ele_list = jnp.arange(ele_pos.shape[0], dtype=jnp.int32)
    else:
        ele_list = jnp.asarray(ele_list, dtype=jnp.int32)
    A = int(ang_list.shape[0])
    E = int(ele_list.shape[0])

    # Pixel tiling: lane-aligned tiles; pad npix so the tile divides it.
    npix128 = _round_up(npix, _LANE)
    tp = tile_p if tile_p is not None else _DEFAULT_TILE_P
    tp = min(_round_up(tp, _LANE), npix128)
    npix_pad = _round_up(npix128, tp)
    n_tiles = npix_pad // tp

    # ------- delay / apodization / demod-phasor tables (setup, plain JAX) -------
    txdel, txapo, rxdel, rxapo = _delay_apod_tables(
        grid, angles, ele_pos, time_zero, fs, c, ang_list, ele_list)
    gz = grid[:, 2]
    tx_rows = [txdel, txapo]
    rx_rows = [rxdel, rxapo]
    if use_demod:
        # theta = 2*pi*fdemod*(delays/fs - 2*gz/c) split into tx + rx parts, so the
        # kernel only needs 4 mul + 2 add per pixel instead of cos/sin on the EUP.
        th_tx = (2.0 * PI * float(fdemod)) * (txdel / float(fs) - gz[None, :] * 2.0 / float(c))
        th_rx = (2.0 * PI * float(fdemod)) * (rxdel / float(fs))
        tx_rows += [jnp.cos(th_tx), jnp.sin(th_tx)]
        rx_rows += [jnp.cos(th_rx), jnp.sin(th_rx)]
    tx_tab = jnp.stack(tx_rows, axis=1)        # (A, R, npix)
    rx_tab = jnp.stack(rx_rows, axis=1)        # (E, R, npix)
    R = tx_tab.shape[1]

    pad = npix_pad - npix
    if pad:
        tx_tab = jnp.pad(tx_tab, ((0, 0), (0, 0), (0, pad)))
        rx_tab = jnp.pad(rx_tab, ((0, 0), (0, 0), (0, pad)))

    # ------- raw RF traces, pre-gathered and lane-dense: (E, A, 2, nsamps) -------
    i_sel = idata.astype(jnp.float32)[ang_list][:, ele_list]   # (A, E, nsamps)
    q_sel = qdata.astype(jnp.float32)[ang_list][:, ele_list]
    iq = jnp.transpose(jnp.stack([i_sel, q_sel], axis=2), (1, 0, 2, 3))  # (E, A, 2, nsamps)

    kernel = functools.partial(_das_pw_kernel, nangles=A, nsamps=nsamps,
                               use_demod=use_demod)

    in_specs = [
        # tx tables: all angles resident for the whole pixel tile (re-DMA only when p changes)
        pl.BlockSpec((A, R, tp), lambda p, j: (0, 0, p)),
        # rx tables: one element per step
        pl.BlockSpec((None, R, tp), lambda p, j: (j, 0, p)),
        # I/Q traces: all angles of one element, samples on the lane axis
        pl.BlockSpec((None, A, 2, nsamps), lambda p, j: (j, 0, 0, 0)),
    ]
    out_specs = [
        pl.BlockSpec((1, tp), lambda p, j: (0, p)),            # idas (accumulated over j)
        pl.BlockSpec((1, tp), lambda p, j: (0, p)),            # qdas
        pl.BlockSpec((None, 1, tp), lambda p, j: (j, 0, p)),   # ch1 I (lane-dense)
        pl.BlockSpec((None, 1, tp), lambda p, j: (j, 0, p)),   # ch1 Q (lane-dense)
        pl.BlockSpec((None, 1, tp), lambda p, j: (j, 0, p)),   # apod1
    ]
    out_shapes = (
        jax.ShapeDtypeStruct((1, npix_pad), jnp.float32),
        jax.ShapeDtypeStruct((1, npix_pad), jnp.float32),
        jax.ShapeDtypeStruct((E, 1, npix_pad), jnp.float32),
        jax.ShapeDtypeStruct((E, 1, npix_pad), jnp.float32),
        jax.ShapeDtypeStruct((E, 1, npix_pad), jnp.float32),
    )

    idas_p, qdas_p, chi_p, chq_p, apod_p = pl.pallas_call(
        kernel,
        out_shape=out_shapes,
        grid=(n_tiles, E),
        in_specs=in_specs,
        out_specs=out_specs,
        compiler_params=pltpu.CompilerParams(
            # pixel tiles are disjoint -> safe to shard across TensorCores (v7x);
            # the element axis carries the accumulator -> "arbitrary".
            dimension_semantics=("parallel", "arbitrary"),
            vmem_limit_bytes=48 * 1024 * 1024),
    )(tx_tab, rx_tab, iq)

    idas = idas_p[0, :npix].reshape(out_sp)
    qdas = qdas_p[0, :npix].reshape(out_sp)
    chi = chi_p[:, 0, :npix]                                   # (E, npix)
    chq = chq_p[:, 0, :npix]
    ch1 = jnp.transpose(jnp.stack([chi, chq], axis=1), (2, 1, 0))   # (npix, 2, E)
    apod1 = jnp.transpose(apod_p[:, 0, :npix], (1, 0))              # (npix, E)
    return idas, qdas, ch1, apod1


# ---------------------------------------------------------------------------
# Pure-JAX reference (independent gather-based interpolation) for verification.
# ---------------------------------------------------------------------------
def das_pw_reference(idata, qdata, grid_3d, angles, ele_pos, time_zero,
                     fs, c, fdemod, ang_list, ele_list):
    out_sp = grid_3d.shape[:-1]
    grid = grid_3d.reshape(-1, 3).astype(jnp.float32)
    npix = grid.shape[0]
    nsamps = idata.shape[-1]
    gz = grid[:, 2]

    txdel, txapo, rxdel, rxapo = _delay_apod_tables(
        grid, angles, ele_pos, time_zero, fs, c, ang_list, ele_list)

    A = int(ang_list.shape[0])
    E = int(ele_list.shape[0])
    idas = jnp.zeros(npix, jnp.float32)
    qdas = jnp.zeros(npix, jnp.float32)
    ch1 = jnp.zeros((npix, 2, E), jnp.float32)
    apod1 = jnp.zeros((npix, E), jnp.float32)

    def interp(data, delays):
        i0 = jnp.floor(delays).astype(jnp.int32)
        i1 = i0 + 1
        frac = delays - jnp.floor(delays)
        v0 = jnp.where((i0 >= 0) & (i0 < nsamps), data[jnp.clip(i0, 0, nsamps - 1)], 0.0)
        v1 = jnp.where((i1 >= 0) & (i1 < nsamps), data[jnp.clip(i1, 0, nsamps - 1)], 0.0)
        return v0 * (1.0 - frac) + v1 * frac

    for i in range(A):
        t = int(ang_list[i])
        for j in range(E):
            r = int(ele_list[j])
            delays = txdel[i] + rxdel[j]
            ifoc = interp(idata[t, r].astype(jnp.float32), delays)
            qfoc = interp(qdata[t, r].astype(jnp.float32), delays)
            if float(fdemod) != 0.0:
                tshift = delays / fs - gz * 2.0 / c
                theta = 2.0 * PI * fdemod * tshift
                ifoc, qfoc = (ifoc * jnp.cos(theta) - qfoc * jnp.sin(theta),
                              qfoc * jnp.cos(theta) + ifoc * jnp.sin(theta))
            apods = txapo[i] * rxapo[j]
            idas = idas + ifoc * apods
            qdas = qdas + qfoc * apods
            ch1 = ch1.at[:, 0, j].set(ifoc * apods)
            ch1 = ch1.at[:, 1, j].set(qfoc * apods)
            apod1 = apod1.at[:, j].set(apods)
    return idas.reshape(out_sp), qdas.reshape(out_sp), ch1, apod1


if __name__ == "__main__":
    # Small, deterministic synthetic acquisition (PlaneWaveData-like).
    nangles, nelems, nsamps = 3, 4, 256
    ncols, nrows = 8, 16                                  # npix = 128

    angles = jnp.array([-0.1, 0.0, 0.1], dtype=jnp.float32)
    ele_x = jnp.linspace(-0.006, 0.006, nelems, dtype=jnp.float32)
    ele_pos = jnp.stack([ele_x, jnp.zeros_like(ele_x), jnp.zeros_like(ele_x)], axis=-1)
    fs = 20e6
    fdemod = 5e6          # nonzero -> exercises the phasor-rotation path
    c = 1540.0
    time_zero = jnp.full((nangles,), 1e-6, dtype=jnp.float32)

    xs = jnp.linspace(-0.004, 0.004, ncols, dtype=jnp.float32)
    zs = jnp.linspace(0.001, 0.005, nrows, dtype=jnp.float32)
    gX, gZ = jnp.meshgrid(xs, zs, indexing="ij")
    grid_3d = jnp.stack([gX, jnp.zeros_like(gX), gZ], axis=-1)   # (ncols, nrows, 3)

    key = jax.random.PRNGKey(0)
    k1, k2 = jax.random.split(key)
    idata = jax.random.normal(k1, (nangles, nelems, nsamps), dtype=jnp.float32)
    qdata = jax.random.normal(k2, (nangles, nelems, nsamps), dtype=jnp.float32)

    ang_list = jnp.arange(nangles, dtype=jnp.int32)
    ele_list = jnp.arange(nelems, dtype=jnp.int32)

    outs = das_pw_forward(idata, qdata, grid_3d, angles, ele_pos, time_zero,
                          fs, c, fdemod, ang_list, ele_list)
    outs = jax.block_until_ready(outs)

    refs = das_pw_reference(idata, qdata, grid_3d, angles, ele_pos, time_zero,
                            fs, c, fdemod, ang_list, ele_list)
    for o, r in zip(outs, refs):
        np.testing.assert_allclose(np.asarray(o), np.asarray(r), rtol=1e-3, atol=1e-3)

    print("KERNEL_OK")
</pallas_src>

<mosaic_0001>
module attributes {stable_mosaic.version = 11 : i64} {
  func.func @_das_pw_kernel(%arg0: i32, %arg1: i32, %arg2: memref<3x4x128xf32, #tpu.memory_space<vmem>>, %arg3: memref<1x4x128xf32, #tpu.memory_space<vmem>>, %arg4: memref<1x3x2x256xf32, #tpu.memory_space<vmem>>, %arg5: memref<1x128xf32, #tpu.memory_space<vmem>>, %arg6: memref<1x128xf32, #tpu.memory_space<vmem>>, %arg7: memref<1x1x128xf32, #tpu.memory_space<vmem>>, %arg8: memref<1x1x128xf32, #tpu.memory_space<vmem>>, %arg9: memref<1x1x128xf32, #tpu.memory_space<vmem>>) attributes {dimension_semantics = [#tpu.dimension_semantics<parallel>, #tpu.dimension_semantics<arbitrary>], iteration_bounds = array<i64: 1, 4>, scalar_prefetch = 0 : i64, scratch_operands = 0 : i64, tpu.core_type = #tpu.core_type<tc>, window_params = [{transform_indices = @transform_0, window_bounds = array<i64: 3, 4, 128>}, {transform_indices = @transform_1, window_bounds = array<i64: 1, 4, 128>}, {transform_indices = @transform_2, window_bounds = array<i64: 1, 3, 2, 256>}, {transform_indices = @transform_3, window_bounds = array<i64: 1, 128>}, {transform_indices = @transform_4, window_bounds = array<i64: 1, 128>}, {transform_indices = @transform_5, window_bounds = array<i64: 1, 1, 128>}, {transform_indices = @transform_6, window_bounds = array<i64: 1, 1, 128>}, {transform_indices = @transform_7, window_bounds = array<i64: 1, 1, 128>}]} {
    %c0_i32 = arith.constant 0 : i32
    %0 = arith.cmpi eq, %arg1, %c0_i32 : i32
    %1 = arith.extui %0 : i1 to i32
    %c0_i32_0 = arith.constant 0 : i32
    %2 = arith.cmpi ne, %1, %c0_i32_0 : i32
    scf.if %2 {
      %cst_61 = arith.constant 0.000000e+00 : f32
      %163 = vector.broadcast %cst_61 : f32 to vector<1x128xf32>
      %c0_62 = arith.constant 0 : index
      %c0_63 = arith.constant 0 : index
      %164 = vector.load %arg5[%c0_62, %c0_63] : memref<1x128xf32, #tpu.memory_space<vmem>>, vector<1x128xf32>
      tpu.vector_store %arg5[%c0_62, %c0_63], %163 {strides = array<i32>} : memref<1x128xf32, #tpu.memory_space<vmem>>, vector<1x128xf32>,
      %cst_64 = arith.constant 0.000000e+00 : f32
      %165 = vector.broadcast %cst_64 : f32 to vector<1x128xf32>
      %c0_65 = arith.constant 0 : index
      %c0_66 = arith.constant 0 : index
      %166 = vector.load %arg6[%c0_65, %c0_66] : memref<1x128xf32, #tpu.memory_space<vmem>>, vector<1x128xf32>
      tpu.vector_store %arg6[%c0_65, %c0_66], %165 {strides = array<i32>} : memref<1x128xf32, #tpu.memory_space<vmem>>, vector<1x128xf32>,
    } else {
    }
    %c0 = arith.constant 0 : index
    %c0_1 = arith.constant 0 : index
    %c0_2 = arith.constant 0 : index
    %3 = vector.load %arg3[%c0, %c0_1, %c0_2] : memref<1x4x128xf32, #tpu.memory_space<vmem>>, vector<1x4x128xf32>
    %4 = vector.shape_cast %3 : vector<1x4x128xf32> to vector<4x128xf32>
    %5 = vector.extract_strided_slice %4 {offsets = [0, 0], sizes = [1, 128], strides = [1, 1]} : vector<4x128xf32> to vector<1x128xf32>
    %6 = vector.extract_strided_slice %4 {offsets = [1, 0], sizes = [1, 128], strides = [1, 1]} : vector<4x128xf32> to vector<1x128xf32>
    %7 = tpu.iota {dimensions = array<i32: 0>} : vector<256x128xi32>
    %8 = arith.sitofp %7 : vector<256x128xi32> to vector<256x128xf32>
    %cst = arith.constant 0.000000e+00 : f32
    %9 = vector.broadcast %cst : f32 to vector<1x128xf32>
    %c0_i32_3 = arith.constant 0 : i32
    %10 = arith.index_cast %c0_i32_3 : i32 to index
    %c0_4 = arith.constant 0 : index
    %c0_5 = arith.constant 0 : index
    %11 = vector.load %arg2[%10, %c0_4, %c0_5] : memref<3x4x128xf32, #tpu.memory_space<vmem>>, vector<1x4x128xf32>
    %12 = vector.shape_cast %11 : vector<1x4x128xf32> to vector<4x128xf32>
    %13 = vector.extract_strided_slice %12 {offsets = [0, 0], sizes = [1, 128], strides = [1, 1]} : vector<4x128xf32> to vector<1x128xf32>
    %14 = arith.addf %13, %5 : vector<1x128xf32>
    %15 = vector.extract_strided_slice %12 {offsets = [1, 0], sizes = [1, 128], strides = [1, 1]} : vector<4x128xf32> to vector<1x128xf32>
    %16 = arith.mulf %15, %6 : vector<1x128xf32>
    %17 = vector.broadcast %14 : vector<1x128xf32> to vector<256x128xf32>
    %18 = arith.subf %8, %17 : vector<256x128xf32>
    %19 = math.absf %18 : vector<256x128xf32>
    %cst_6 = arith.constant 1.000000e+00 : f32
    %20 = vector.broadcast %cst_6 : f32 to vector<256x128xf32>
    %21 = arith.subf %20, %19 : vector<256x128xf32>
    %cst_7 = arith.constant 0.000000e+00 : f32
    %22 = vector.broadcast %cst_7 : f32 to vector<256x128xf32>
    %23 = arith.maximumf %21, %22 : vector<256x128xf32>
    %c0_8 = arith.constant 0 : index
    %24 = arith.index_cast %c0_i32_3 : i32 to index
    %c0_9 = arith.constant 0 : index
    %c0_10 = arith.constant 0 : index
    %25 = vector.load %arg4[%c0_8, %24, %c0_9, %c0_10] : memref<1x3x2x256xf32, #tpu.memory_space<vmem>>, vector<1x1x2x256xf32>
    %26 = vector.shape_cast %25 : vector<1x1x2x256xf32> to vector<2x256xf32>
    %cst_11 = arith.constant dense<0.000000e+00> : vector<2x128xf32>
    %27 = tpu.matmul %26, %23, %cst_11 {dimension_numbers = #tpu.dot_dimension_numbers<[1], [0], [0], [1], [0, 0, 1, 1], [], []>} : vector<2x256xf32>, vector<256x128xf32>, vector<2x128xf32> -> vector<2x128xf32>
    %28 = vector.extract_strided_slice %27 {offsets = [0, 0], sizes = [1, 128], strides = [1, 1]} : vector<2x128xf32> to vector<1x128xf32>
    %29 = vector.extract_strided_slice %27 {offsets = [1, 0], sizes = [1, 128], strides = [1, 1]} : vector<2x128xf32> to vector<1x128xf32>
    %30 = vector.extract_strided_slice %12 {offsets = [2, 0], sizes = [1, 128], strides = [1, 1]} : vector<4x128xf32> to vector<1x128xf32>
    %31 = vector.extract_strided_slice %4 {offsets = [2, 0], sizes = [1, 128], strides = [1, 1]} : vector<4x128xf32> to vector<1x128xf32>
    %32 = arith.mulf %30, %31 : vector<1x128xf32>
    %33 = vector.extract_strided_slice %12 {offsets = [3, 0], sizes = [1, 128], strides = [1, 1]} : vector<4x128xf32> to vector<1x128xf32>
    %34 = vector.extract_strided_slice %4 {offsets = [3, 0], sizes = [1, 128], strides = [1, 1]} : vector<4x128xf32> to vector<1x128xf32>
    %35 = arith.mulf %33, %34 : vector<1x128xf32>
    %36 = arith.subf %32, %35 : vector<1x128xf32>
    %37 = vector.extract_strided_slice %12 {offsets = [3, 0], sizes = [1, 128], strides = [1, 1]} : vector<4x128xf32> to vector<1x128xf32>
    %38 = vector.extract_strided_slice %4 {offsets = [2, 0], sizes = [1, 128], strides = [1, 1]} : vector<4x128xf32> to vector<1x128xf32>
    %39 = arith.mulf %37, %38 : vector<1x128xf32>
    %40 = vector.extract_strided_slice %12 {offsets = [2, 0], sizes = [1, 128], strides = [1, 1]} : vector<4x128xf32> to vector<1x128xf32>
    %41 = vector.extract_strided_slice %4 {offsets = [3, 0], sizes = [1, 128], strides = [1, 1]} : vector<4x128xf32> to vector<1x128xf32>
    %42 = arith.mulf %40, %41 : vector<1x128xf32>
    %43 = arith.addf %39, %42 : vector<1x128xf32>
    %44 = arith.mulf %28, %36 : vector<1x128xf32>
    %45 = arith.mulf %29, %43 : vector<1x128xf32>
    %46 = arith.subf %44, %45 : vector<1x128xf32>
    %47 = arith.mulf %29, %36 : vector<1x128xf32>
    %48 = arith.mulf %28, %43 : vector<1x128xf32>
    %49 = arith.addf %47, %48 : vector<1x128xf32>
    %50 = arith.mulf %46, %16 : vector<1x128xf32>
    %51 = arith.mulf %49, %16 : vector<1x128xf32>
    %c0_12 = arith.constant 0 : index
    %c0_13 = arith.constant 0 : index
    %52 = vector.load %arg5[%c0_12, %c0_13] : memref<1x128xf32, #tpu.memory_space<vmem>>, vector<1x128xf32>
    %53 = arith.addf %52, %50 : vector<1x128xf32>
    %c0_14 = arith.constant 0 : index
    %c0_15 = arith.constant 0 : index
    %54 = vector.load %arg5[%c0_14, %c0_15] : memref<1x128xf32, #tpu.memory_space<vmem>>, vector<1x128xf32>
    tpu.vector_store %arg5[%c0_14, %c0_15], %53 {strides = array<i32>} : memref<1x128xf32, #tpu.memory_space<vmem>>, vector<1x128xf32>,
    %c0_16 = arith.constant 0 : index
    %c0_17 = arith.constant 0 : index
    %55 = vector.load %arg6[%c0_16, %c0_17] : memref<1x128xf32, #tpu.memory_space<vmem>>, vector<1x128xf32>
    %56 = arith.addf %55, %51 : vector<1x128xf32>
    %c0_18 = arith.constant 0 : index
    %c0_19 = arith.constant 0 : index
    %57 = vector.load %arg6[%c0_18, %c0_19] : memref<1x128xf32, #tpu.memory_space<vmem>>, vector<1x128xf32>
    tpu.vector_store %arg6[%c0_18, %c0_19], %56 {strides = array<i32>} : memref<1x128xf32, #tpu.memory_space<vmem>>, vector<1x128xf32>,
    %c1_i32 = arith.constant 1 : i32
    %58 = arith.index_cast %c1_i32 : i32 to index
    %c0_20 = arith.constant 0 : index
    %c0_21 = arith.constant 0 : index
    %59 = vector.load %arg2[%58, %c0_20, %c0_21] : memref<3x4x128xf32, #tpu.memory_space<vmem>>, vector<1x4x128xf32>
    %60 = vector.shape_cast %59 : vector<1x4x128xf32> to vector<4x128xf32>
    %61 = vector.extract_strided_slice %60 {offsets = [0, 0], sizes = [1, 128], strides = [1, 1]} : vector<4x128xf32> to vector<1x128xf32>
    %62 = arith.addf %61, %5 : vector<1x128xf32>
    %63 = vector.extract_strided_slice %60 {offsets = [1, 0], sizes = [1, 128], strides = [1, 1]} : vector<4x128xf32> to vector<1x128xf32>
    %64 = arith.mulf %63, %6 : vector<1x128xf32>
    %65 = vector.broadcast %62 : vector<1x128xf32> to vector<256x128xf32>
    %66 = arith.subf %8, %65 : vector<256x128xf32>
    %67 = math.absf %66 : vector<256x128xf32>
    %cst_22 = arith.constant 1.000000e+00 : f32
    %68 = vector.broadcast %cst_22 : f32 to vector<256x128xf32>
    %69 = arith.subf %68, %67 : vector<256x128xf32>
    %cst_23 = arith.constant 0.000000e+00 : f32
    %70 = vector.broadcast %cst_23 : f32 to vector<256x128xf32>
    %71 = arith.maximumf %69, %70 : vector<256x128xf32>
    %c0_24 = arith.constant 0 : index
    %72 = arith.index_cast %c1_i32 : i32 to index
    %c0_25 = arith.constant 0 : index
    %c0_26 = arith.constant 0 : index
    %73 = vector.load %arg4[%c0_24, %72, %c0_25, %c0_26] : memref<1x3x2x256xf32, #tpu.memory_space<vmem>>, vector<1x1x2x256xf32>
    %74 = vector.shape_cast %73 : vector<1x1x2x256xf32> to vector<2x256xf32>
    %cst_27 = arith.constant dense<0.000000e+00> : vector<2x128xf32>
    %75 = tpu.matmul %74, %71, %cst_27 {dimension_numbers = #tpu.dot_dimension_numbers<[1], [0], [0], [1], [0, 0, 1, 1], [], []>} : vector<2x256xf32>, vector<256x128xf32>, vector<2x128xf32> -> vector<2x128xf32>
    %76 = vector.extract_strided_slice %75 {offsets = [0, 0], sizes = [1, 128], strides = [1, 1]} : vector<2x128xf32> to vector<1x128xf32>
    %77 = vector.extract_strided_slice %75 {offsets = [1, 0], sizes = [1, 128], strides = [1, 1]} : vector<2x128xf32> to vector<1x128xf32>
    %78 = vector.extract_strided_slice %60 {offsets = [2, 0], sizes = [1, 128], strides = [1, 1]} : vector<4x128xf32> to vector<1x128xf32>
    %79 = vector.extract_strided_slice %4 {offsets = [2, 0], sizes = [1, 128], strides = [1, 1]} : vector<4x128xf32> to vector<1x128xf32>
    %80 = arith.mulf %78, %79 : vector<1x128xf32>
    %81 = vector.extract_strided_slice %60 {offsets = [3, 0], sizes = [1, 128], strides = [1, 1]} : vector<4x128xf32> to vector<1x128xf32>
    %82 = vector.extract_strided_slice %4 {offsets = [3, 0], sizes = [1, 128], strides = [1, 1]} : vector<4x128xf32> to vector<1x128xf32>
    %83 = arith.mulf %81, %82 : vector<1x128xf32>
    %84 = arith.subf %80, %83 : vector<1x128xf32>
    %85 = vector.extract_strided_slice %60 {offsets = [3, 0], sizes = [1, 128], strides = [1, 1]} : vector<4x128xf32> to vector<1x128xf32>
    %86 = vector.extract_strided_slice %4 {offsets = [2, 0], sizes = [1, 128], strides = [1, 1]} : vector<4x128xf32> to vector<1x128xf32>
    %87 = arith.mulf %85, %86 : vector<1x128xf32>
    %88 = vector.extract_strided_slice %60 {offsets = [2, 0], sizes = [1, 128], strides = [1, 1]} : vector<4x128xf32> to vector<1x128xf32>
    %89 = vector.extract_strided_slice %4 {offsets = [3, 0], sizes = [1, 128], strides = [1, 1]} : vector<4x128xf32> to vector<1x128xf32>
    %90 = arith.mulf %88, %89 : vector<1x128xf32>
    %91 = arith.addf %87, %90 : vector<1x128xf32>
    %92 = arith.mulf %76, %84 : vector<1x128xf32>
    %93 = arith.mulf %77, %91 : vector<1x128xf32>
    %94 = arith.subf %92, %93 : vector<1x128xf32>
    %95 = arith.mulf %77, %84 : vector<1x128xf32>
    %96 = arith.mulf %76, %91 : vector<1x128xf32>
    %97 = arith.addf %95, %96 : vector<1x128xf32>
    %98 = arith.mulf %94, %64 : vector<1x128xf32>
    %99 = arith.mulf %97, %64 : vector<1x128xf32>
    %c0_28 = arith.constant 0 : index
    %c0_29 = arith.constant 0 : index
    %100 = vector.load %arg5[%c0_28, %c0_29] : memref<1x128xf32, #tpu.memory_space<vmem>>, vector<1x128xf32>
    %101 = arith.addf %100, %98 : vector<1x128xf32>
    %c0_30 = arith.constant 0 : index
    %c0_31 = arith.constant 0 : index
    %102 = vector.load %arg5[%c0_30, %c0_31] : memref<1x128xf32, #tpu.memory_space<vmem>>, vector<1x128xf32>
    tpu.vector_store %arg5[%c0_30, %c0_31], %101 {strides = array<i32>} : memref<1x128xf32, #tpu.memory_space<vmem>>, vector<1x128xf32>,
    %c0_32 = arith.constant 0 : index
    %c0_33 = arith.constant 0 : index
    %103 = vector.load %arg6[%c0_32, %c0_33] : memref<1x128xf32, #tpu.memory_space<vmem>>, vector<1x128xf32>
    %104 = arith.addf %103, %99 : vector<1x128xf32>
    %c0_34 = arith.constant 0 : index
    %c0_35 = arith.constant 0 : index
    %105 = vector.load %arg6[%c0_34, %c0_35] : memref<1x128xf32, #tpu.memory_space<vmem>>, vector<1x128xf32>
    tpu.vector_store %arg6[%c0_34, %c0_35], %104 {strides = array<i32>} : memref<1x128xf32, #tpu.memory_space<vmem>>, vector<1x128xf32>,
    %c2_i32 = arith.constant 2 : i32
    %106 = arith.index_cast %c2_i32 : i32 to index
    %c0_36 = arith.constant 0 : index
    %c0_37 = arith.constant 0 : index
    %107 = vector.load %arg2[%106, %c0_36, %c0_37] : memref<3x4x128xf32, #tpu.memory_space<vmem>>, vector<1x4x128xf32>
    %108 = vector.shape_cast %107 : vector<1x4x128xf32> to vector<4x128xf32>
    %109 = vector.extract_strided_slice %108 {offsets = [0, 0], sizes = [1, 128], strides = [1, 1]} : vector<4x128xf32> to vector<1x128xf32>
    %110 = arith.addf %109, %5 : vector<1x128xf32>
    %111 = vector.extract_strided_slice %108 {offsets = [1, 0], sizes = [1, 128], strides = [1, 1]} : vector<4x128xf32> to vector<1x128xf32>
    %112 = arith.mulf %111, %6 : vector<1x128xf32>
    %113 = vector.broadcast %110 : vector<1x128xf32> to vector<256x128xf32>
    %114 = arith.subf %8, %113 : vector<256x128xf32>
    %115 = math.absf %114 : vector<256x128xf32>
    %cst_38 = arith.constant 1.000000e+00 : f32
    %116 = vector.broadcast %cst_38 : f32 to vector<256x128xf32>
    %117 = arith.subf %116, %115 : vector<256x128xf32>
    %cst_39 = arith.constant 0.000000e+00 : f32
    %118 = vector.broadcast %cst_39 : f32 to vector<256x128xf32>
    %119 = arith.maximumf %117, %118 : vector<256x128xf32>
    %c0_40 = arith.constant 0 : index
    %120 = arith.index_cast %c2_i32 : i32 to index
    %c0_41 = arith.constant 0 : index
    %c0_42 = arith.constant 0 : index
    %121 = vector.load %arg4[%c0_40, %120, %c0_41, %c0_42] : memref<1x3x2x256xf32, #tpu.memory_space<vmem>>, vector<1x1x2x256xf32>
    %122 = vector.shape_cast %121 : vector<1x1x2x256xf32> to vector<2x256xf32>
    %cst_43 = arith.constant dense<0.000000e+00> : vector<2x128xf32>
    %123 = tpu.matmul %122, %119, %cst_43 {dimension_numbers = #tpu.dot_dimension_numbers<[1], [0], [0], [1], [0, 0, 1, 1], [], []>} : vector<2x256xf32>, vector<256x128xf32>, vector<2x128xf32> -> vector<2x128xf32>
    %124 = vector.extract_strided_slice %123 {offsets = [0, 0], sizes = [1, 128], strides = [1, 1]} : vector<2x128xf32> to vector<1x128xf32>
    %125 = vector.extract_strided_slice %123 {offsets = [1, 0], sizes = [1, 128], strides = [1, 1]} : vector<2x128xf32> to vector<1x128xf32>
    %126 = vector.extract_strided_slice %108 {offsets = [2, 0], sizes = [1, 128], strides = [1, 1]} : vector<4x128xf32> to vector<1x128xf32>
    %127 = vector.extract_strided_slice %4 {offsets = [2, 0], sizes = [1, 128], strides = [1, 1]} : vector<4x128xf32> to vector<1x128xf32>
    %128 = arith.mulf %126, %127 : vector<1x128xf32>
    %129 = vector.extract_strided_slice %108 {offsets = [3, 0], sizes = [1, 128], strides = [1, 1]} : vector<4x128xf32> to vector<1x128xf32>
    %130 = vector.extract_strided_slice %4 {offsets = [3, 0], sizes = [1, 128], strides = [1, 1]} : vector<4x128xf32> to vector<1x128xf32>
    %131 = arith.mulf %129, %130 : vector<1x128xf32>
    %132 = arith.subf %128, %131 : vector<1x128xf32>
    %133 = vector.extract_strided_slice %108 {offsets = [3, 0], sizes = [1, 128], strides = [1, 1]} : vector<4x128xf32> to vector<1x128xf32>
    %134 = vector.extract_strided_slice %4 {offsets = [2, 0], sizes = [1, 128], strides = [1, 1]} : vector<4x128xf32> to vector<1x128xf32>
    %135 = arith.mulf %133, %134 : vector<1x128xf32>
    %136 = vector.extract_strided_slice %108 {offsets = [2, 0], sizes = [1, 128], strides = [1, 1]} : vector<4x128xf32> to vector<1x128xf32>
    %137 = vector.extract_strided_slice %4 {offsets = [3, 0], sizes = [1, 128], strides = [1, 1]} : vector<4x128xf32> to vector<1x128xf32>
    %138 = arith.mulf %136, %137 : vector<1x128xf32>
    %139 = arith.addf %135, %138 : vector<1x128xf32>
    %140 = arith.mulf %124, %132 : vector<1x128xf32>
    %141 = arith.mulf %125, %139 : vector<1x128xf32>
    %142 = arith.subf %140, %141 : vector<1x128xf32>
    %143 = arith.mulf %125, %132 : vector<1x128xf32>
    %144 = arith.mulf %124, %139 : vector<1x128xf32>
    %145 = arith.addf %143, %144 : vector<1x128xf32>
    %146 = arith.mulf %142, %112 : vector<1x128xf32>
    %147 = arith.mulf %145, %112 : vector<1x128xf32>
    %c0_44 = arith.constant 0 : index
    %c0_45 = arith.constant 0 : index
    %148 = vector.load %arg5[%c0_44, %c0_45] : memref<1x128xf32, #tpu.memory_space<vmem>>, vector<1x128xf32>
    %149 = arith.addf %148, %146 : vector<1x128xf32>
    %c0_46 = arith.constant 0 : index
    %c0_47 = arith.constant 0 : index
    %150 = vector.load %arg5[%c0_46, %c0_47] : memref<1x128xf32, #tpu.memory_space<vmem>>, vector<1x128xf32>
    tpu.vector_store %arg5[%c0_46, %c0_47], %149 {strides = array<i32>} : memref<1x128xf32, #tpu.memory_space<vmem>>, vector<1x128xf32>,
    %c0_48 = arith.constant 0 : index
    %c0_49 = arith.constant 0 : index
    %151 = vector.load %arg6[%c0_48, %c0_49] : memref<1x128xf32, #tpu.memory_space<vmem>>, vector<1x128xf32>
    %152 = arith.addf %151, %147 : vector<1x128xf32>
    %c0_50 = arith.constant 0 : index
    %c0_51 = arith.constant 0 : index
    %153 = vector.load %arg6[%c0_50, %c0_51] : memref<1x128xf32, #tpu.memory_space<vmem>>, vector<1x128xf32>
    tpu.vector_store %arg6[%c0_50, %c0_51], %152 {strides = array<i32>} : memref<1x128xf32, #tpu.memory_space<vmem>>, vector<1x128xf32>,
    %c3_i32 = arith.constant 3 : i32
    %c0_52 = arith.constant 0 : index
    %c0_53 = arith.constant 0 : index
    %c0_54 = arith.constant 0 : index
    %154 = vector.load %arg7[%c0_52, %c0_53, %c0_54] : memref<1x1x128xf32, #tpu.memory_space<vmem>>, vector<1x1x128xf32>
    %155 = vector.shape_cast %154 : vector<1x1x128xf32> to vector<1x128xf32>
    %156 = vector.shape_cast %146 : vector<1x128xf32> to vector<1x1x128xf32>
    tpu.vector_store %arg7[%c0_52, %c0_53, %c0_54], %156 {strides = array<i32>} : memref<1x1x128xf32, #tpu.memory_space<vmem>>, vector<1x1x128xf32>,
    %c0_55 = arith.constant 0 : index
    %c0_56 = arith.constant 0 : index
    %c0_57 = arith.constant 0 : index
    %157 = vector.load %arg8[%c0_55, %c0_56, %c0_57] : memref<1x1x128xf32, #tpu.memory_space<vmem>>, vector<1x1x128xf32>
    %158 = vector.shape_cast %157 : vector<1x1x128xf32> to vector<1x128xf32>
    %159 = vector.shape_cast %147 : vector<1x128xf32> to vector<1x1x128xf32>
    tpu.vector_store %arg8[%c0_55, %c0_56, %c0_57], %159 {strides = array<i32>} : memref<1x1x128xf32, #tpu.memory_space<vmem>>, vector<1x1x128xf32>,
    %c0_58 = arith.constant 0 : index
    %c0_59 = arith.constant 0 : index
    %c0_60 = arith.constant 0 : index
    %160 = vector.load %arg9[%c0_58, %c0_59, %c0_60] : memref<1x1x128xf32, #tpu.memory_space<vmem>>, vector<1x1x128xf32>
    %161 = vector.shape_cast %160 : vector<1x1x128xf32> to vector<1x128xf32>
    %162 = vector.shape_cast %112 : vector<1x128xf32> to vector<1x1x128xf32>
    tpu.vector_store %arg9[%c0_58, %c0_59, %c0_60], %162 {strides = array<i32>} : memref<1x1x128xf32, #tpu.memory_space<vmem>>, vector<1x1x128xf32>,
    return
  }
  func.func @transform_0(%arg0: i32, %arg1: i32) -> (i32, i32, i32) {
    %c0_i32 = arith.constant 0 : i32
    %c0_i32_0 = arith.constant 0 : i32
    %c0_i32_1 = arith.constant 0 : i32
    return %c0_i32, %c0_i32_0, %arg0 : i32, i32, i32
  }
  func.func @transform_1(%arg0: i32, %arg1: i32) -> (i32, i32, i32) {
    %c0_i32 = arith.constant 0 : i32
    %c0_i32_0 = arith.constant 0 : i32
    return %arg1, %c0_i32, %arg0 : i32, i32, i32
  }
  func.func @transform_2(%arg0: i32, %arg1: i32) -> (i32, i32, i32, i32) {
    %c0_i32 = arith.constant 0 : i32
    %c0_i32_0 = arith.constant 0 : i32
    %c0_i32_1 = arith.constant 0 : i32
    %c0_i32_2 = arith.constant 0 : i32
    return %arg1, %c0_i32, %c0_i32_0, %c0_i32_1 : i32, i32, i32, i32
  }
  func.func @transform_3(%arg0: i32, %arg1: i32) -> (i32, i32) {
    %c0_i32 = arith.constant 0 : i32
    %c0_i32_0 = arith.constant 0 : i32
    return %c0_i32, %arg0 : i32, i32
  }
  func.func @transform_4(%arg0: i32, %arg1: i32) -> (i32, i32) {
    %c0_i32 = arith.constant 0 : i32
    %c0_i32_0 = arith.constant 0 : i32
    return %c0_i32, %arg0 : i32, i32
  }
  func.func @transform_5(%arg0: i32, %arg1: i32) -> (i32, i32, i32) {
    %c0_i32 = arith.constant 0 : i32
    %c0_i32_0 = arith.constant 0 : i32
    return %arg1, %c0_i32, %arg0 : i32, i32, i32
  }
  func.func @transform_6(%arg0: i32, %arg1: i32) -> (i32, i32, i32) {
    %c0_i32 = arith.constant 0 : i32
    %c0_i32_0 = arith.constant 0 : i32
    return %arg1, %c0_i32, %arg0 : i32, i32, i32
  }
  func.func @transform_7(%arg0: i32, %arg1: i32) -> (i32, i32, i32) {
    %c0_i32 = arith.constant 0 : i32
    %c0_i32_0 = arith.constant 0 : i32
    return %arg1, %c0_i32, %arg0 : i32, i32, i32
  }
}

</mosaic_0001>

<bundles_post_ra>
// kernel: tpu_custom_call.1
= control target key start
LH: loop header
LB: loop body
LE: loop exit
PB: predicated region body
PF: predicated region fallthrough
CT: control target
= control target key end

     0   :  { %s2993_s0 = inlined_call_operand.hbm [shape: f32[3,4,128], index: 0, kind: input, shape index: {}]   ;;  %s2994_s1 = inlined_call_operand.hbm [shape: f32[4,4,128], index: 1, kind: input, shape index: {}]   ;;  %s2995_s2 = inlined_call_operand.hbm [shape: f32[4,3,2,256], index: 2, kind: input, shape index: {}]   ;;  %s2996_s3 = inlined_call_operand.hbm [shape: f32[1,128], index: 3, kind: output, shape index: {0}]   ;;  %s2997_s4 = inlined_call_operand.hbm [shape: f32[1,128], index: 4, kind: output, shape index: {1}]   ;;  %s2998_s5 = inlined_call_operand.hbm [shape: f32[4,1,128], index: 5, kind: output, shape index: {2}]   ;;  %s2999_s6 = inlined_call_operand.hbm [shape: f32[4,1,128], index: 6, kind: output, shape index: {3}]   ;;  %s3000_s7 = inlined_call_operand.hbm [shape: f32[4,1,128], index: 7, kind: output, shape index: {4}]  }
   0x1   :  { %3010 = sst [smem:[#allocation21_spill]] %s2994_s1 }
   0x2   :  { %13 = vsyncpa [#allocation3], 0 }
   0x3   :  { %14 = vsyncpa [#allocation6], 0 }
   0x4   :  { %16 = vsyncpa [#allocation6 + $0x1], 0 }
   0x5   :  { %17 = vsyncpa [#allocation4], 0 }
   0x6   :  { %18 = vsyncpa [#allocation10], 0  ;;  %s2242_s24 = smov 0   ;;  %s2244_s25 = smov 0  }
   0x7   :  { %s2246_s26 = smov 0   ;;  %s2248_s27 = smov 0  }
   0x8   :  { %s2250_s28 = smov 0   ;;  %s2252_s29 = smov 0  }
   0x9 LB: > { %3011 = sst [smem:[#allocation19_spill]] %s2184_s28  ;;  %s33_s30 = sadd.s32 1, %s2184_s28  ;;  %s2188_s29 = sphi %s2252_s29, %s24_s29   ;;  %s2184_s28 = sphi %s2250_s28, %s3041_s28   ;;  %s2180_s27 = sphi %s2248_s27, %s3040_s27   ;;  %s2176_s26 = sphi %s2246_s26, %s3044_s26   ;;  %s2172_s25 = sphi %s2244_s25, %s3043_s25   ;;  %s2168_s24 = sphi %s2242_s24, %s3042_s24  }
   0xa   : > { %s71_s8 = sadd.s32 1, %s2176_s26  ;;  %p34_p0 = scmp.ge.s32.totalorder %s33_s30, 4 }
   0xb   : > { %p78_p1 = scmp.ne.s32.totalorder %s2176_s26, %s2172_s25  ;;  %p79_p2 = scmp.eq.s32.totalorder %s2188_s29, 0 }
   0xc   : > { %s3046_s30 = smov (%p34_p0, %s33_s30), 0  ;;  %p1832_p4 = scmp.lt.s32.totalorder %s2188_s29, 4 }
   0xd   : > { %3012 = sst [smem:[#allocation20_spill]] %s3046_s30  ;;  %p80_p3 = por %p79_p2, %p78_p1 }
   0xe   : > { %s66_s9 = ssub.s32 %s2184_s28, %s3046_s30  ;;  %s285_s10 = sand.u32 1, %s2188_s29  }
   0xf   : > { %p69_p5 = scmp.eq.s32.totalorder %s66_s9, 0  ;;  %s287_s11 = sand.u32 1, %s2176_s26  }
  0x10   : > { %s1564_s12 = sshll.u32 %s2184_s28, 6  ;;  %s1563_s14 = sshll.u32 %s287_s11, 2 }
  0x11   : > { %s2289_s13 = scalar_select %p69_p5, %s2176_s26, %s71_s8  }
  0x12   : > { %s3013_s1 = sld [smem:[#allocation21_spill]]  ;;  %p2296_p6 = pnand %p1832_p4, %p80_p3 }
  0x13   : > { %s289_s19 = scalar_lea.vmem [#allocation5], %s1563_s14  ;;  %s2300_s21 = smul.u32 12, %s287_s11 }
  0x14   : > { %s297_s20 = sshll.u32 %s289_s19, 4  ;;  %s2304_s22 = scalar_lea.sflag [#allocation6], %s285_s10  ;;  %s2302_s20 = int_to_ptr.vmem [resolvable:$true] %s297_s20 }
  0x15   : > { %p1900_p8 = pneg %p2296_p6 }
  0x18   : > { %s2294_s17 = scalar_lea.hbm %s3013_s1, %s1564_s12  ;;  %s1903_s12 = scalar_lea.hbm %s3013_s1, 256 }
  0x19   : > { %s1898_s23 = scalar_lea.hbm %s2294_s17, 64  ;;  %p1904_p11 = scmp.lt.u32.totalorder %s2294_s17, %s3013_s1 }
  0x1a   : > { %p1899_p7 = scmp.ne.s32.totalorder %s2294_s17, %s1898_s23  ;;  %p1905_p12 = scmp.lt.u32.totalorder %s1903_s12, %s1898_s23 }
  0x1b   : > { %p1907_p0 = scmp.lt.u32.totalorder %s1898_s23, %s2294_s17 }
  0x1c   : > { %p1901_p9 = pnand %p1900_p8, %p1899_p7  ;;  %p1906_p13 = por %p1905_p12, %p1904_p11 }
  0x1e   : > { %p1902_p10 = pneg %p1901_p9  ;;  %p1908_p2 = por %p1907_p0, %p1906_p13 }
  0x20   : > { %p1909_p3 = pnand %p1908_p2, %p1902_p10 }
  0x22   : > { %1912 = shalt.err (!%p1909_p3)
}
  0x23   : > { %s1913_s10 = scalar_lea.vmem %s2302_s20, 64  ;;  %s2190_s11 = smov [#allocation5]  }
  0x24   : > { %p1914_p4 = scmp.ne.s32.totalorder %s2302_s20, %s1913_s10  ;;  %s1918_s16 = sshll.u32 %s2190_s11, 4  ;;  %s1919_s16 = int_to_ptr.vmem [resolvable:$false] %s1918_s16 }
  0x25   : > { %s1920_s19 = scalar_lea.vmem %s1919_s16, 128  ;;  %p1921_p9 = scmp.lt.s32.totalorder %s2302_s20, %s1919_s16 }
  0x26   : > { %p1916_p5 = pnand %p1914_p4, %p1900_p8  ;;  %p1922_p11 = scmp.lt.s32.totalorder %s1920_s19, %s1913_s10 }
  0x28   : > { %p1917_p7 = pneg %p1916_p5  ;;  %p1923_p12 = por %p1922_p11, %p1921_p9 }
  0x2a   : > { %p1924_p13 = pnand %p1923_p12, %p1917_p7 }
  0x2c   : > { %1927 = shalt.err (!%p1924_p13)
}
  0x2d   : > { %1817 = dma.hbm_to_vmem [thread:$0]  (!%p2296_p6), %s2294_s17, 64, %s2302_s20, %s2304_s22  }
  0x2e   : > { %s1786_s23 = smul.u32 192, %s2184_s28  ;;  %s308_s8 = scalar_lea.vmem [#allocation7], %s2300_s21 }
  0x2f   : > { %s315_s9 = sshll.u32 %s308_s8, 4  ;;  %s2335_s12 = sadd.s32 4294967295, %s2188_s29   ;;  %s2365_s9 = int_to_ptr.vmem [resolvable:$true] %s315_s9 }
  0x30   : > { %s3001_s14 = sadd.s32 4294967294, %s2188_s29   ;;  %p84_p10 = scmp.ne.s32.totalorder %s2172_s25, %s2168_s24 }
  0x31   : > { %p3005_p0 = scmp.eq.s32.totalorder %s2335_s12, 0  ;;  %p3004_p2 = scmp.eq.s32.totalorder %s2335_s12, 3 }
  0x32   : > { %p194_p3 = scmp.eq.s32.totalorder %s3001_s14, 3  ;;  %p1560_p5 = scmp.ge.s32.totalorder %s2188_s29, 1 }
  0x33   : > { %p2346_p4 = por %p3005_p0, %p84_p10  ;;  %p2356_p7 = por %p3004_p2, %p78_p1 }
  0x34   : > { %p2360_p9 = por %p194_p3, %p84_p10  ;;  %p257_p11 = scmp.lt.s32.totalorder %s2188_s29, 5 }
  0x35   : > { %s3015_s15 = scalar_select %p2346_p4, 1, 0 }
  0x36   : > { %s3016_s17 = scalar_select %p2356_p7, 1, 0 }
  0x37   : > { %s3017_s20 = scalar_select %p2360_p9, 1, 0 }
  0x38   : > { %p2367_p12 = pnand %p1560_p5, %p257_p11  ;;  %s2191_s21 = smov [#allocation2]  }
  0x39   : > { %s2371_s10 = sshll.u32 %s2191_s21, 4  ;;  %s2378_s19 = scalar_lea.hbm %s2995_s2, %s1786_s23  ;;  %s272_s10 = int_to_ptr.vmem [resolvable:$true] %s2371_s10 }
  0x3a   : > { %s3018_s24 = scalar_select %p2367_p12, 1, 0 }
  0x3b   : > { %s1928_s8 = scalar_lea.hbm %s2378_s19, 192  ;;  %s1933_s1 = scalar_lea.hbm %s2995_s2, 768 }
  0x3c   : > { %p1929_p13 = scmp.ne.s32.totalorder %s2378_s19, %s1928_s8  ;;  %p1934_p5 = scmp.lt.u32.totalorder %s2378_s19, %s2995_s2 }
  0x3d   : > { %p1935_p11 = scmp.lt.u32.totalorder %s1933_s1, %s1928_s8  ;;  %p1937_p1 = scmp.lt.u32.totalorder %s1928_s8, %s2378_s19 }
  0x3e   : > { %p1931_p10 = pnand %p1929_p13, %p1900_p8 }
  0x3f   : > { %p1936_p2 = por %p1935_p11, %p1934_p5 }
  0x40   : > { %p1932_p3 = pneg %p1931_p10 }
  0x41   : > { %p1938_p0 = por %p1937_p1, %p1936_p2 }
  0x43   : > { %p1939_p9 = pnand %p1938_p0, %p1932_p3 }
  0x45   : > { %1942 = shalt.err (!%p1939_p9)
}
  0x46   : > { %s1943_s23 = scalar_lea.vmem %s2365_s9, 192  ;;  %s2192_s14 = smov [#allocation7]  }
  0x47   : > { %p1944_p13 = scmp.ne.s32.totalorder %s2365_s9, %s1943_s23  ;;  %s1948_s11 = sshll.u32 %s2192_s14, 4  ;;  %s1949_s11 = int_to_ptr.vmem [resolvable:$false] %s1948_s11 }
  0x48   : > { %s1950_s28 = scalar_lea.vmem %s1949_s11, 384  ;;  %p1951_p4 = scmp.lt.s32.totalorder %s2365_s9, %s1949_s11 }
  0x49   : > { %p1946_p10 = pnand %p1944_p13, %p1900_p8  ;;  %p1952_p5 = scmp.lt.s32.totalorder %s1950_s28, %s1943_s23 }
  0x4b   : > { %p1947_p7 = pneg %p1946_p10  ;;  %p1953_p11 = por %p1952_p5, %p1951_p4 }
  0x4d   : > { %p1954_p2 = pnand %p1953_p11, %p1947_p7 }
  0x4f   : > { %1957 = shalt.err (!%p1954_p2)
}
  0x50   : > { %s2193_s1 = smov 64   ;;  %s2194_s30 = smov 4  }
  0x51   : > { %1820 = dma.hbm_to_vmem [thread:$0]  (!%p2296_p6), %s2378_s19, 192, %s2365_s9, %s2304_s22, %s2193_s1, %s2193_s1, %s2194_s30  }
  0x52   : > { %p3019_p8 = scmp.eq.s32.totalorder %s2335_s12, 0  ;;  %p3020_p0 = pneg %p2367_p12 }
  0x53   : > { %s1958_s23 = scalar_lea.hbm %s2993_s0, 192 }
  0x54   : > { %p2410_p9 = pnand %p3020_p0, %p3019_p8  ;;  %p1959_p4 = scmp.ne.s32.totalorder %s2993_s0, %s1958_s23 }
  0x55   : > { %p1965_p3 = scmp.lt.u32.totalorder %s1958_s23, %s2993_s0 }
  0x56   : > { %p1960_p7 = pneg %p2410_p9 }
  0x58   : > { %p1961_p6 = pnand %p1960_p7, %p1959_p4 }
  0x5a   : > { %p1962_p1 = pneg %p1961_p6 }
  0x5c   : > { %p1967_p13 = pnand %p1965_p3, %p1962_p1 }
  0x5e   : > { %1970 = shalt.err (!%p1967_p13)
}
  0x5f   : > { %s1971_s9 = scalar_lea.vmem %s272_s10, 192  ;;  %p1979_p2 = scmp.lt.s32.totalorder %s272_s10, %s272_s10 }
  0x60   : > { %p1972_p10 = scmp.ne.s32.totalorder %s272_s10, %s1971_s9  ;;  %p1980_p8 = scmp.lt.s32.totalorder %s1971_s9, %s1971_s9 }
  0x62   : > { %p1974_p5 = pnand %p1972_p10, %p1960_p7  ;;  %p1981_p0 = por %p1980_p8, %p1979_p2 }
  0x64   : > { %p1975_p11 = pneg %p1974_p5 }
  0x66   : > { %p1982_p12 = pnand %p1981_p0, %p1975_p11 }
  0x68   : > { %1985 = shalt.err (!%p1982_p12)
}
  0x69   : > { %1813 = dma.hbm_to_vmem [thread:$0]  (!%p2410_p9), %s2993_s0, 192, %s272_s10, [#allocation3], %s2193_s1, %s2193_s1, %s2194_s30  }
  0x6a   : > { %p3022_p4 = scmp.ne.s32.totalorder %s3018_s24, 0 }
  0x6b   : > { %p3023_p6 = scmp.eq.s32.totalorder (!%p3022_p4), %s2335_s12, 0 }
  0x6c   : > { %327 = sbr.rel (%p3022_p4) target bundleno = 609 (0x261), region = 32 }
  0x73   : > { %2147 = dma.done.wait (%p3023_p6), [#allocation3], 192   ;;  %p3024_p7 = pmov %p3023_p6 }
  0x74   : > { %s3009_s8 = sand.u32 1, %s2335_s12   ;;  %s2438_s21 = sand.u32 1, %s2172_s25  }
  0x75   : > { %2149 = vsyncadd (%p3024_p7), [#allocation3], 4294967104  ;;  %s1568_s16 = sshll.u32 %s2438_s21, 2  ;;  %s334_s10 = scalar_lea.sflag [#allocation6], %s3009_s8 }
  0x76   : > { %s2443_s1 = scalar_lea.vmem [#allocation5], %s1568_s16  ;;  %p3025_p12 = scmp.ne.s32.totalorder %s3015_s15, 0 }
  0x78   : > { %2151 = dma.done.wait (%p3025_p12), %s334_s10, 256  }
  0x79   : > { %2153 = vsyncadd (%p3025_p12), %s334_s10, 4294967040  ;;  %s1787_s24 = smul.u32 12, %s2438_s21  ;;  %s376_s23 = scalar_lea.vmem [#allocation11], %s2438_s21 }
  0x7a   : > { %s382_s14 = scalar_lea.vmem [#allocation12], %s2438_s21  ;;  %s388_s11 = scalar_lea.vmem [#allocation13], %s2438_s21 }
  0x7b   : > { %s2450_s30 = scalar_lea.vmem [#allocation7], %s1787_s24  ;;  %p1569_p9 = scmp.ne.s32.totalorder %s2180_s27, 0 }
  0x7c   : > { %v2195_v0 = vmov (!%p1569_p9), 0.0  }
  0x7d   : > { %392 = sbr.rel (%p1569_p9) target bundleno = 132 (0x84), region = 48  ;;  %393 = vst [vmem:[#allocation8] sm:$0x1] (!%p1569_p9), %v2195_v0  ;;  %394 = vst [vmem:[#allocation9] sm:$0x1] (!%p1569_p9), %v2195_v0 }
  0x84 PF: > { %v395_v1 = vld [vmem:[%s2443_s1] sm:$0xf]  ;;  %v396_v2 = vlaneseq  ;;  %v461_v3 = vld [vmem:[#allocation2] sm:$0xf]  ;;  %v741_v4 = vld [vmem:[#allocation2 + $0x4] sm:$0xf] }
  0x85   : > { %v2458_v5 = vld.sshfl [vmem:[%s2450_s30] sm:$0x33 pattern:$0x76325410]  ;;  %v1017_v6 = vld [vmem:[#allocation2 + $0x8] sm:$0xf]  ;;  %v462_v8 = vadd.f32 %v461_v3, %v395_v1  ;;  %v742_v11 = vadd.f32 %v741_v4, %v395_v1 }
  0x86   : > { %v2460_v7 = vshrl.u32 %v396_v2, 7  ;;  %v605_v9 = vcombine.high %v2458_v5, %v2458_v5  ;;  %v2465_v10 = vld.sshfl [vmem:[%s2450_s30 + $0x4] sm:$0x33 pattern:$0x76325410]  ;;  %v2467_v12 = vadd.f32 %v1017_v6, %v395_v1  ;;  %s2197_s15 = smov [#allocation8]  }
  0x87   : > { %v886_v13 = vcombine.high %v2465_v10, %v2465_v10  ;;  %s1316_s18 = sshll.u32 %s2197_s15, 4  ;;  %s1577_s22 = sshll.u32 %s2180_s27, 4  ;;  %s2806_s18 = int_to_ptr.vmem [resolvable:$true] %s1316_s18 }
  0x88   : > { %v413_v14 = vadd.s32 128, %v2460_v7  ;;  %v414_v15 = vadd.s32 136, %v2460_v7  ;;  %v2474_v16 = vsub.s32 0, %v2460_v7  ;;  %v398_v17 = vadd.s32 8, %v2460_v7  ;;  %672 = vmatprep.mubr.f32.mxu0 %v605_v9  ;;  %s1343_s9 = sshll.u32 %s376_s23, 4  ;;  %s1357_s19 = sshll.u32 %s382_s14, 4  ;;  %s2822_s9 = int_to_ptr.vmem [resolvable:$true] %s1343_s9  ;;  %s2832_s19 = int_to_ptr.vmem [resolvable:$true] %s1357_s19 }
  0x89   : > { %v2478_v18 = vcvt.s32.f32 %v2460_v7  ;;  %v415_v19 = vadd.s32 144, %v2460_v7  ;;  %v416_v20 = vadd.s32 152, %v2460_v7  ;;  %v399_v21 = vadd.s32 16, %v2460_v7  ;;  %953 = vmatprep.mubr.f32.mxu1 %v886_v13  ;;  %s2198_s28 = smov [#allocation9]   ;;  %s2816_s27 = scalar_lea.hbm %s2998_s5, %s1577_s22 }
  0x8a   : > { %v2483_v22 = vcvt.s32.f32 %v413_v14  ;;  %v2485_v23 = vcvt.s32.f32 %v414_v15  ;;  %v2488_v24 = vrot.slane %v462_v8, %v2474_v16  ;;  %v2490_v25 = vcvt.s32.f32 %v398_v17  ;;  %s1329_s16 = sshll.u32 %s2198_s28, 4  ;;  %s1371_s24 = sshll.u32 %s388_s11, 4  ;;  %s2834_s16 = int_to_ptr.vmem [resolvable:$true] %s1329_s16  ;;  %s2841_s24 = int_to_ptr.vmem [resolvable:$true] %s1371_s24 }
  0x8b   : > { %v2492_v26 = vcvt.s32.f32 %v415_v19  ;;  %v2494_v27 = vcvt.s32.f32 %v416_v20  ;;  %v400_v28 = vadd.s32 24, %v2460_v7  ;;  %v2497_v29 = vcvt.s32.f32 %v399_v21  ;;  %s2830_s28 = scalar_lea.hbm %s2999_s6, %s1577_s22  ;;  %s2839_s10 = scalar_lea.hbm %s3000_s7, %s1577_s22 }
  0x8c   : > { %v484_v30 = vsub.f32 %v2483_v22, %v2488_v24  ;;  %v485_v31 = vsub.f32 %v2485_v23, %v2488_v24  ;;  %v468_v32 = vsub.f32 %v2478_v18, %v2488_v24  ;;  %v469_v33 = vsub.f32 %v2490_v25, %v2488_v24  ;;  %s1986_s21 = scalar_lea.vmem %s2806_s18, 16  ;;  %p3026_p3 = scmp.eq.s32.totalorder %s2335_s12, 3 }
  0x8d   : > { %v486_v34 = vsub.f32 %v2492_v26, %v2488_v24  ;;  %v487_v35 = vsub.f32 %v2494_v27, %v2488_v24  ;;  %v2511_v36 = vcvt.s32.f32 %v400_v28  ;;  %v470_v37 = vsub.f32 %v2497_v29, %v2488_v24  ;;  %p1987_p1 = scmp.ne.s32.totalorder %s2806_s18, %s1986_s21  ;;  %p1993_p5 = scmp.lt.s32.totalorder %s2806_s18, %s2806_s18 }
  0x8e   : > { %v516_v38 = vand.u32 2147483647, %v484_v30  ;;  %v517_v39 = vand.u32 2147483647, %v485_v31  ;;  %v500_v40 = vand.u32 2147483647, %v468_v32  ;;  %v2516_v41 = vrot.slane %v742_v11, %v2474_v16 }
  0x8f   : > { %v501_v42 = vand.u32 2147483647, %v469_v33  ;;  %v518_v43 = vand.u32 2147483647, %v486_v34  ;;  %v519_v44 = vand.u32 2147483647, %v487_v35  ;;  %v471_v45 = vsub.f32 %v2511_v36, %v2488_v24  ;;  %p1988_p13 = pnand %p1987_p1, %p3026_p3 }
  0x90   : > { %v548_v46 = vsub.f32 1.0, %v516_v38  ;;  %v549_v47 = vsub.f32 1.0, %v517_v39  ;;  %v532_v48 = vsub.f32 1.0, %v500_v40  ;;  %v502_v49 = vand.u32 2147483647, %v470_v37 }
  0x91   : > { %v533_v50 = vsub.f32 1.0, %v501_v42  ;;  %v550_v51 = vsub.f32 1.0, %v518_v43  ;;  %v551_v52 = vsub.f32 1.0, %v519_v44  ;;  %v503_v53 = vand.u32 2147483647, %v471_v45  ;;  %p1989_p10 = pneg %p1988_p13 }
  0x92   : > { %v580_v54 = vmax.f32 %v548_v46, 0.0  ;;  %v581_v55 = vmax.f32 %v549_v47, 0.0  ;;  %v564_v56 = vmax.f32 %v532_v48, 0.0  ;;  %v534_v57 = vsub.f32 1.0, %v502_v49 }
  0x93   : > { %v565_v58 = vmax.f32 %v533_v50, 0.0  ;;  %v582_v59 = vmax.f32 %v550_v51, 0.0  ;;  %v583_v60 = vmax.f32 %v551_v52, 0.0  ;;  %v535_v61 = vsub.f32 1.0, %v503_v53 }
  0x94   : > { %v1689_v62 = vpack.c.bf16 %v581_v55, %v580_v54  ;;  %v566_v63 = vmax.f32 %v534_v57, 0.0  ;;  %v417_v0 = vadd.s32 160, %v2460_v7  ;;  %v418_v1 = vadd.s32 168, %v2460_v7 }
  0x95   : > { %v1691_v2 = vpack.c.bf16 %v565_v58, %v564_v56  ;;  %v1693_v3 = vpack.c.bf16 %v583_v60, %v582_v59  ;;  %v567_v4 = vmax.f32 %v535_v61, 0.0  ;;  %v401_v6 = vadd.s32 32, %v2460_v7 }
  0x96   : > { %1690 = vmatprep.subr.bf16.mxu0 %v1689_v62  ;;  %v2523_v8 = vcvt.s32.f32 %v417_v0  ;;  %v2525_v9 = vcvt.s32.f32 %v418_v1  ;;  %v402_v11 = vadd.s32 40, %v2460_v7  ;;  %v764_v13 = vsub.f32 %v2483_v22, %v2516_v41 }
  0x97   : > { %1692 = vmatpush3.bf16.msra.mxu0 %v1691_v2  ;;  %v1695_v14 = vpack.c.bf16 %v567_v4, %v566_v63  ;;  %v2530_v15 = vcvt.s32.f32 %v401_v6  ;;  %v765_v17 = vsub.f32 %v2485_v23, %v2516_v41  ;;  %v748_v19 = vsub.f32 %v2478_v18, %v2516_v41 }
  0x98   : > { %1694 = vmatprep.subr.bf16.mxu0 %v1693_v3  ;;  %v488_v20 = vsub.f32 %v2523_v8, %v2488_v24  ;;  %v489_v21 = vsub.f32 %v2525_v9, %v2488_v24  ;;  %v2540_v28 = vcvt.s32.f32 %v402_v11  ;;  %v796_v30 = vand.u32 2147483647, %v764_v13 }
  0x99   : > { %v472_v31 = vsub.f32 %v2530_v15, %v2488_v24  ;;  %v797_v32 = vand.u32 2147483647, %v765_v17  ;;  %v749_v33 = vsub.f32 %v2490_v25, %v2516_v41  ;;  %v780_v34 = vand.u32 2147483647, %v748_v19 }
  0x9a   : > { %v520_v35 = vand.u32 2147483647, %v488_v20  ;;  %v521_v37 = vand.u32 2147483647, %v489_v21  ;;  %v473_v38 = vsub.f32 %v2540_v28, %v2488_v24  ;;  %v828_v39 = vsub.f32 1.0, %v796_v30 }
  0x9b   : > { %1696 = vmatpush3.bf16.msra.mxu0 %v1695_v14  ;;  %v504_v40 = vand.u32 2147483647, %v472_v31  ;;  %v829_v42 = vsub.f32 1.0, %v797_v32  ;;  %v781_v43 = vand.u32 2147483647, %v749_v33  ;;  %v812_v44 = vsub.f32 1.0, %v780_v34 }
  0x9c   : > { %v552_v45 = vsub.f32 1.0, %v520_v35  ;;  %v553_v46 = vsub.f32 1.0, %v521_v37  ;;  %v505_v47 = vand.u32 2147483647, %v473_v38  ;;  %v860_v48 = vmax.f32 %v828_v39, 0.0 }
  0x9d   : > { %v536_v49 = vsub.f32 1.0, %v504_v40  ;;  %v861_v50 = vmax.f32 %v829_v42, 0.0  ;;  %v813_v51 = vsub.f32 1.0, %v781_v43  ;;  %v844_v52 = vmax.f32 %v812_v44, 0.0 }
  0x9e   : > { %v584_v53 = vmax.f32 %v552_v45, 0.0  ;;  %v585_v54 = vmax.f32 %v553_v46, 0.0  ;;  %v537_v55 = vsub.f32 1.0, %v505_v47  ;;  %v419_v56 = vadd.s32 176, %v2460_v7 }
  0x9f   : > { %v568_v57 = vmax.f32 %v536_v49, 0.0  ;;  %v1721_v58 = vpack.c.bf16 %v861_v50, %v860_v48  ;;  %v845_v59 = vmax.f32 %v813_v51, 0.0  ;;  %v420_v60 = vadd.s32 184, %v2460_v7 }
  0xa0   : > { %v1697_v61 = vpack.c.bf16 %v585_v54, %v584_v53  ;;  %v569_v62 = vmax.f32 %v537_v55, 0.0  ;;  %v2550_v63 = vcvt.s32.f32 %v419_v56  ;;  %v403_v0 = vadd.s32 48, %v2460_v7 }
  0xa1   : > { %1722 = vmatprep.subr.bf16.mxu1 %v1721_v58  ;;  %v1723_v1 = vpack.c.bf16 %v845_v59, %v844_v52  ;;  %v2553_v2 = vcvt.s32.f32 %v420_v60  ;;  %v404_v3 = vadd.s32 56, %v2460_v7  ;;  %v766_v4 = vsub.f32 %v2492_v26, %v2516_v41 }
  0xa2   : > { %1698 = vmatprep.subr.bf16.mxu0 %v1697_v61  ;;  %v1699_v6 = vpack.c.bf16 %v569_v62, %v568_v57  ;;  %v490_v11 = vsub.f32 %v2550_v63, %v2488_v24  ;;  %v2560_v13 = vcvt.s32.f32 %v403_v0  ;;  %v767_v14 = vsub.f32 %v2494_v27, %v2516_v41 }
  0xa3   : > { %1724 = vmatpush3.bf16.msra.mxu1 %v1723_v1  ;;  %v491_v17 = vsub.f32 %v2553_v2, %v2488_v24  ;;  %v2566_v19 = vcvt.s32.f32 %v404_v3  ;;  %v798_v20 = vand.u32 2147483647, %v766_v4  ;;  %v750_v21 = vsub.f32 %v2497_v29, %v2516_v41 }
  0xa4   : > { %1700 = vmatpush3.bf16.msra.mxu0 %v1699_v6  ;;  %v522_v30 = vand.u32 2147483647, %v490_v11  ;;  %v474_v31 = vsub.f32 %v2560_v13, %v2488_v24  ;;  %v799_v32 = vand.u32 2147483647, %v767_v14  ;;  %v751_v33 = vsub.f32 %v2511_v36, %v2516_v41 }
  0xa5   : > { %v523_v34 = vand.u32 2147483647, %v491_v17  ;;  %v475_v35 = vsub.f32 %v2566_v19, %v2488_v24  ;;  %v830_v37 = vsub.f32 1.0, %v798_v20  ;;  %v782_v38 = vand.u32 2147483647, %v750_v21 }
  0xa6   : > { %v554_v39 = vsub.f32 1.0, %v522_v30  ;;  %v506_v40 = vand.u32 2147483647, %v474_v31  ;;  %v831_v42 = vsub.f32 1.0, %v799_v32  ;;  %v783_v43 = vand.u32 2147483647, %v751_v33 }
  0xa7   : > { %v555_v44 = vsub.f32 1.0, %v523_v34  ;;  %v507_v45 = vand.u32 2147483647, %v475_v35  ;;  %v862_v46 = vmax.f32 %v830_v37, 0.0  ;;  %v814_v47 = vsub.f32 1.0, %v782_v38 }
  0xa8   : > { %v586_v48 = vmax.f32 %v554_v39, 0.0  ;;  %v538_v49 = vsub.f32 1.0, %v506_v40  ;;  %v863_v50 = vmax.f32 %v831_v42, 0.0  ;;  %v815_v51 = vsub.f32 1.0, %v783_v43 }
  0xa9   : > { %v587_v52 = vmax.f32 %v555_v44, 0.0  ;;  %v539_v53 = vsub.f32 1.0, %v507_v45  ;;  %v846_v54 = vmax.f32 %v814_v47, 0.0  ;;  %v421_v55 = vadd.s32 192, %v2460_v7 }
  0xaa   : > { %v570_v56 = vmax.f32 %v538_v49, 0.0  ;;  %v1725_v57 = vpack.c.bf16 %v863_v50, %v862_v46  ;;  %v847_v58 = vmax.f32 %v815_v51, 0.0  ;;  %v422_v59 = vadd.s32 200, %v2460_v7 }
  0xab   : > { %v1701_v60 = vpack.c.bf16 %v587_v52, %v586_v48  ;;  %v571_v61 = vmax.f32 %v539_v53, 0.0  ;;  %v2578_v62 = vcvt.s32.f32 %v421_v55  ;;  %v405_v0 = vadd.s32 64, %v2460_v7 }
  0xac   : > { %1726 = vmatprep.subr.bf16.mxu1 %v1725_v57  ;;  %v1727_v1 = vpack.c.bf16 %v847_v58, %v846_v54  ;;  %v2581_v3 = vcvt.s32.f32 %v422_v59  ;;  %v406_v4 = vadd.s32 72, %v2460_v7  ;;  %v768_v6 = vsub.f32 %v2523_v8, %v2516_v41 }
  0xad   : > { %1702 = vmatprep.subr.bf16.mxu0 %v1701_v60  ;;  %v1703_v11 = vpack.c.bf16 %v571_v61, %v570_v56  ;;  %v492_v14 = vsub.f32 %v2578_v62, %v2488_v24  ;;  %v2588_v17 = vcvt.s32.f32 %v405_v0  ;;  %v769_v20 = vsub.f32 %v2525_v9, %v2516_v41 }
  0xae   : > { %1728 = vmatpush3.bf16.msra.mxu1 %v1727_v1  ;;  %v493_v21 = vsub.f32 %v2581_v3, %v2488_v24  ;;  %v2594_v30 = vcvt.s32.f32 %v406_v4  ;;  %v800_v31 = vand.u32 2147483647, %v768_v6  ;;  %v752_v32 = vsub.f32 %v2530_v15, %v2516_v41 }
  0xaf   : > { %1704 = vmatpush3.bf16.msra.mxu0 %v1703_v11  ;;  %v524_v33 = vand.u32 2147483647, %v492_v14  ;;  %v476_v34 = vsub.f32 %v2588_v17, %v2488_v24  ;;  %v801_v35 = vand.u32 2147483647, %v769_v20  ;;  %v753_v37 = vsub.f32 %v2540_v28, %v2516_v41 }
  0xb0   : > { %v525_v38 = vand.u32 2147483647, %v493_v21  ;;  %v477_v39 = vsub.f32 %v2594_v30, %v2488_v24  ;;  %v832_v40 = vsub.f32 1.0, %v800_v31  ;;  %v784_v42 = vand.u32 2147483647, %v752_v32 }
  0xb1   : > { %v556_v43 = vsub.f32 1.0, %v524_v33  ;;  %v508_v44 = vand.u32 2147483647, %v476_v34  ;;  %v833_v45 = vsub.f32 1.0, %v801_v35  ;;  %v785_v46 = vand.u32 2147483647, %v753_v37 }
  0xb2   : > { %v557_v47 = vsub.f32 1.0, %v525_v38  ;;  %v509_v48 = vand.u32 2147483647, %v477_v39  ;;  %v864_v49 = vmax.f32 %v832_v40, 0.0  ;;  %v816_v50 = vsub.f32 1.0, %v784_v42 }
  0xb3   : > { %v588_v51 = vmax.f32 %v556_v43, 0.0  ;;  %v540_v52 = vsub.f32 1.0, %v508_v44  ;;  %v865_v53 = vmax.f32 %v833_v45, 0.0  ;;  %v817_v54 = vsub.f32 1.0, %v785_v46 }
  0xb4   : > { %v589_v55 = vmax.f32 %v557_v47, 0.0  ;;  %v541_v56 = vsub.f32 1.0, %v509_v48  ;;  %v848_v57 = vmax.f32 %v816_v50, 0.0  ;;  %v423_v58 = vadd.s32 208, %v2460_v7 }
  0xb5   : > { %v572_v59 = vmax.f32 %v540_v52, 0.0  ;;  %v1729_v60 = vpack.c.bf16 %v865_v53, %v864_v49  ;;  %v849_v61 = vmax.f32 %v817_v54, 0.0  ;;  %v424_v0 = vadd.s32 216, %v2460_v7 }
  0xb6   : > { %v1705_v1 = vpack.c.bf16 %v589_v55, %v588_v51  ;;  %v573_v4 = vmax.f32 %v541_v56, 0.0  ;;  %v2606_v6 = vcvt.s32.f32 %v423_v58  ;;  %v407_v11 = vadd.s32 80, %v2460_v7 }
  0xb7   : > { %1730 = vmatprep.subr.bf16.mxu1 %v1729_v60  ;;  %v1731_v14 = vpack.c.bf16 %v849_v61, %v848_v57  ;;  %v2609_v20 = vcvt.s32.f32 %v424_v0  ;;  %v408_v21 = vadd.s32 88, %v2460_v7  ;;  %v770_v31 = vsub.f32 %v2550_v63, %v2516_v41 }
  0xb8   : > { %1706 = vmatprep.subr.bf16.mxu0 %v1705_v1  ;;  %v1707_v32 = vpack.c.bf16 %v573_v4, %v572_v59  ;;  %v494_v33 = vsub.f32 %v2606_v6, %v2488_v24  ;;  %v2616_v34 = vcvt.s32.f32 %v407_v11  ;;  %v771_v35 = vsub.f32 %v2553_v2, %v2516_v41 }
  0xb9   : > { %1732 = vmatpush3.bf16.msra.mxu1 %v1731_v14  ;;  %v495_v37 = vsub.f32 %v2609_v20, %v2488_v24  ;;  %v2622_v38 = vcvt.s32.f32 %v408_v21  ;;  %v802_v39 = vand.u32 2147483647, %v770_v31  ;;  %v754_v40 = vsub.f32 %v2560_v13, %v2516_v41 }
  0xba   : > { %1708 = vmatpush3.bf16.msra.mxu0 %v1707_v32  ;;  %v526_v42 = vand.u32 2147483647, %v494_v33  ;;  %v478_v43 = vsub.f32 %v2616_v34, %v2488_v24  ;;  %v803_v44 = vand.u32 2147483647, %v771_v35  ;;  %v755_v45 = vsub.f32 %v2566_v19, %v2516_v41 }
  0xbb   : > { %v527_v46 = vand.u32 2147483647, %v495_v37  ;;  %v479_v47 = vsub.f32 %v2622_v38, %v2488_v24  ;;  %v834_v48 = vsub.f32 1.0, %v802_v39  ;;  %v786_v49 = vand.u32 2147483647, %v754_v40 }
  0xbc   : > { %v558_v50 = vsub.f32 1.0, %v526_v42  ;;  %v510_v51 = vand.u32 2147483647, %v478_v43  ;;  %v835_v52 = vsub.f32 1.0, %v803_v44  ;;  %v787_v53 = vand.u32 2147483647, %v755_v45 }
  0xbd   : > { %v559_v54 = vsub.f32 1.0, %v527_v46  ;;  %v511_v55 = vand.u32 2147483647, %v479_v47  ;;  %v866_v56 = vmax.f32 %v834_v48, 0.0  ;;  %v818_v57 = vsub.f32 1.0, %v786_v49 }
  0xbe   : > { %v590_v58 = vmax.f32 %v558_v50, 0.0  ;;  %v542_v59 = vsub.f32 1.0, %v510_v51  ;;  %v867_v60 = vmax.f32 %v835_v52, 0.0  ;;  %v819_v61 = vsub.f32 1.0, %v787_v53 }
  0xbf   : > { %v591_v0 = vmax.f32 %v559_v54, 0.0  ;;  %v543_v1 = vsub.f32 1.0, %v511_v55  ;;  %v850_v4 = vmax.f32 %v818_v57, 0.0  ;;  %v425_v11 = vadd.s32 224, %v2460_v7 }
  0xc0   : > { %v574_v14 = vmax.f32 %v542_v59, 0.0  ;;  %v1733_v21 = vpack.c.bf16 %v867_v60, %v866_v56  ;;  %v851_v31 = vmax.f32 %v819_v61, 0.0  ;;  %v426_v32 = vadd.s32 232, %v2460_v7 }
  0xc1   : > { %v1709_v33 = vpack.c.bf16 %v591_v0, %v590_v58  ;;  %v575_v35 = vmax.f32 %v543_v1, 0.0  ;;  %v2634_v37 = vcvt.s32.f32 %v425_v11  ;;  %v409_v39 = vadd.s32 96, %v2460_v7 }
  0xc2   : > { %1734 = vmatprep.subr.bf16.mxu1 %v1733_v21  ;;  %v1735_v40 = vpack.c.bf16 %v851_v31, %v850_v4  ;;  %v2637_v42 = vcvt.s32.f32 %v426_v32  ;;  %v410_v43 = vadd.s32 104, %v2460_v7  ;;  %v772_v44 = vsub.f32 %v2578_v62, %v2516_v41 }
  0xc3   : > { %1710 = vmatprep.subr.bf16.mxu0 %v1709_v33  ;;  %v1711_v45 = vpack.c.bf16 %v575_v35, %v574_v14  ;;  %v496_v46 = vsub.f32 %v2634_v37, %v2488_v24  ;;  %v2644_v47 = vcvt.s32.f32 %v409_v39  ;;  %v773_v48 = vsub.f32 %v2581_v3, %v2516_v41 }
  0xc4   : > { %1736 = vmatpush3.bf16.msra.mxu1 %v1735_v40  ;;  %v497_v49 = vsub.f32 %v2637_v42, %v2488_v24  ;;  %v2650_v50 = vcvt.s32.f32 %v410_v43  ;;  %v804_v51 = vand.u32 2147483647, %v772_v44  ;;  %v756_v52 = vsub.f32 %v2588_v17, %v2516_v41 }
  0xc5   : > { %1712 = vmatpush3.bf16.msra.mxu0 %v1711_v45  ;;  %v528_v53 = vand.u32 2147483647, %v496_v46  ;;  %v480_v54 = vsub.f32 %v2644_v47, %v2488_v24  ;;  %v805_v55 = vand.u32 2147483647, %v773_v48  ;;  %v757_v56 = vsub.f32 %v2594_v30, %v2516_v41 }
  0xc6   : > { %v529_v57 = vand.u32 2147483647, %v497_v49  ;;  %v481_v58 = vsub.f32 %v2650_v50, %v2488_v24  ;;  %v836_v59 = vsub.f32 1.0, %v804_v51  ;;  %v788_v60 = vand.u32 2147483647, %v756_v52 }
  0xc7   : > { %v560_v61 = vsub.f32 1.0, %v528_v53  ;;  %v512_v0 = vand.u32 2147483647, %v480_v54  ;;  %v837_v1 = vsub.f32 1.0, %v805_v55  ;;  %v789_v4 = vand.u32 2147483647, %v757_v56 }
  0xc8   : > { %v561_v11 = vsub.f32 1.0, %v529_v57  ;;  %v513_v14 = vand.u32 2147483647, %v481_v58  ;;  %v868_v21 = vmax.f32 %v836_v59, 0.0  ;;  %v820_v31 = vsub.f32 1.0, %v788_v60 }
  0xc9   : > { %v592_v32 = vmax.f32 %v560_v61, 0.0  ;;  %v544_v33 = vsub.f32 1.0, %v512_v0  ;;  %v869_v35 = vmax.f32 %v837_v1, 0.0  ;;  %v821_v39 = vsub.f32 1.0, %v789_v4 }
  0xca   : > { %v593_v40 = vmax.f32 %v561_v11, 0.0  ;;  %v545_v43 = vsub.f32 1.0, %v513_v14  ;;  %v852_v44 = vmax.f32 %v820_v31, 0.0  ;;  %v427_v45 = vadd.s32 240, %v2460_v7 }
  0xcb   : > { %v576_v46 = vmax.f32 %v544_v33, 0.0  ;;  %v1737_v48 = vpack.c.bf16 %v869_v35, %v868_v21  ;;  %v853_v49 = vmax.f32 %v821_v39, 0.0  ;;  %v428_v51 = vadd.s32 248, %v2460_v7 }
  0xcc   : > { %v1713_v52 = vpack.c.bf16 %v593_v40, %v592_v32  ;;  %v577_v53 = vmax.f32 %v545_v43, 0.0  ;;  %v2662_v54 = vcvt.s32.f32 %v427_v45  ;;  %v411_v55 = vadd.s32 112, %v2460_v7 }
  0xcd   : > { %1738 = vmatprep.subr.bf16.mxu1 %v1737_v48  ;;  %v1739_v56 = vpack.c.bf16 %v853_v49, %v852_v44  ;;  %v2665_v57 = vcvt.s32.f32 %v428_v51  ;;  %v412_v58 = vadd.s32 120, %v2460_v7  ;;  %v774_v59 = vsub.f32 %v2606_v6, %v2516_v41 }
  0xce   : > { %1714 = vmatprep.subr.bf16.mxu0 %v1713_v52  ;;  %v1715_v60 = vpack.c.bf16 %v577_v53, %v576_v46  ;;  %v498_v61 = vsub.f32 %v2662_v54, %v2488_v24  ;;  %v2672_v0 = vcvt.s32.f32 %v411_v55  ;;  %v775_v1 = vsub.f32 %v2609_v20, %v2516_v41 }
  0xcf   : > { %1740 = vmatpush3.bf16.msra.mxu1 %v1739_v56  ;;  %v499_v4 = vsub.f32 %v2665_v57, %v2488_v24  ;;  %v2678_v11 = vcvt.s32.f32 %v412_v58  ;;  %v806_v14 = vand.u32 2147483647, %v774_v59  ;;  %v758_v21 = vsub.f32 %v2616_v34, %v2516_v41 }
  0xd0   : > { %1716 = vmatpush3.bf16.msra.mxu0 %v1715_v60  ;;  %v530_v31 = vand.u32 2147483647, %v498_v61  ;;  %v482_v32 = vsub.f32 %v2672_v0, %v2488_v24  ;;  %v807_v33 = vand.u32 2147483647, %v775_v1  ;;  %v759_v35 = vsub.f32 %v2622_v38, %v2516_v41 }
  0xd1   : > { %v531_v39 = vand.u32 2147483647, %v499_v4  ;;  %v483_v40 = vsub.f32 %v2678_v11, %v2488_v24  ;;  %v838_v43 = vsub.f32 1.0, %v806_v14  ;;  %v790_v44 = vand.u32 2147483647, %v758_v21 }
  0xd2   : > { %v562_v45 = vsub.f32 1.0, %v530_v31  ;;  %v514_v46 = vand.u32 2147483647, %v482_v32  ;;  %v839_v48 = vsub.f32 1.0, %v807_v33  ;;  %v791_v49 = vand.u32 2147483647, %v759_v35 }
  0xd3   : > { %v563_v51 = vsub.f32 1.0, %v531_v39  ;;  %v515_v52 = vand.u32 2147483647, %v483_v40  ;;  %v870_v53 = vmax.f32 %v838_v43, 0.0  ;;  %v822_v55 = vsub.f32 1.0, %v790_v44 }
  0xd4   : > { %v594_v56 = vmax.f32 %v562_v45, 0.0  ;;  %v546_v58 = vsub.f32 1.0, %v514_v46  ;;  %v871_v59 = vmax.f32 %v839_v48, 0.0  ;;  %v823_v60 = vsub.f32 1.0, %v791_v49 }
  0xd5   : > { %v595_v61 = vmax.f32 %v563_v51, 0.0  ;;  %v547_v1 = vsub.f32 1.0, %v515_v52  ;;  %v854_v4 = vmax.f32 %v822_v55, 0.0  ;;  %v2690_v24 = vrot.slane %v2467_v12, %v2474_v16 }
  0xd6   : > { %v578_v14 = vmax.f32 %v546_v58, 0.0  ;;  %v1741_v21 = vpack.c.bf16 %v871_v59, %v870_v53  ;;  %v855_v31 = vmax.f32 %v823_v60, 0.0  ;;  %v776_v32 = vsub.f32 %v2634_v37, %v2516_v41 }
  0xd7   : > { %v1717_v33 = vpack.c.bf16 %v595_v61, %v594_v56  ;;  %v579_v35 = vmax.f32 %v547_v1, 0.0  ;;  %v1040_v39 = vsub.f32 %v2483_v22, %v2690_v24  ;;  %v1041_v40 = vsub.f32 %v2485_v23, %v2690_v24 }
  0xd8   : > { %1742 = vmatprep.subr.bf16.mxu1 %v1741_v21  ;;  %v1743_v43 = vpack.c.bf16 %v855_v31, %v854_v4  ;;  %v1024_v12 = vsub.f32 %v2478_v18, %v2690_v24  ;;  %v1025_v16 = vsub.f32 %v2490_v25, %v2690_v24  ;;  %v777_v44 = vsub.f32 %v2637_v42, %v2516_v41 }
  0xd9   : > { %1718 = vmatprep.subr.bf16.mxu0 %v1717_v33  ;;  %v1719_v45 = vpack.c.bf16 %v579_v35, %v578_v14  ;;  %v1072_v46 = vand.u32 2147483647, %v1040_v39  ;;  %v1073_v48 = vand.u32 2147483647, %v1041_v40  ;;  %v808_v49 = vand.u32 2147483647, %v776_v32 }
  0xda   : > { %1744 = vmatpush3.bf16.msra.mxu1 %v1743_v43  ;;  %v1056_v22 = vand.u32 2147483647, %v1024_v12  ;;  %v1057_v51 = vand.u32 2147483647, %v1025_v16  ;;  %v809_v23 = vand.u32 2147483647, %v777_v44  ;;  %v760_v52 = vsub.f32 %v2644_v47, %v2516_v41 }
  0xdb   : > { %1720 = vmatpush3.bf16.msra.mxu0 %v1719_v45  ;;  %v1104_v18 = vsub.f32 1.0, %v1072_v46  ;;  %v1105_v53 = vsub.f32 1.0, %v1073_v48  ;;  %v840_v55 = vsub.f32 1.0, %v808_v49  ;;  %v761_v25 = vsub.f32 %v2650_v50, %v2516_v41 }
  0xdc   : > { %v1088_v56 = vsub.f32 1.0, %v1056_v22  ;;  %v1089_v58 = vsub.f32 1.0, %v1057_v51  ;;  %v841_v59 = vsub.f32 1.0, %v809_v23  ;;  %v792_v60 = vand.u32 2147483647, %v760_v52 }
  0xdd   : > { %v1136_v61 = vmax.f32 %v1104_v18, 0.0  ;;  %v1137_v1 = vmax.f32 %v1105_v53, 0.0  ;;  %v872_v4 = vmax.f32 %v840_v55, 0.0  ;;  %v793_v14 = vand.u32 2147483647, %v761_v25 }
  0xde   : > { %673 = vmatmul.mubr.f32.vlgmr.msra.gmra.mrb[0].mxu0 %v2458_v5  ;;  %v1120_v21 = vmax.f32 %v1088_v56, 0.0  ;;  %v1121_v31 = vmax.f32 %v1089_v58, 0.0  ;;  %v873_v32 = vmax.f32 %v841_v59, 0.0  ;;  %v824_v33 = vsub.f32 1.0, %v792_v60 }
  0xdf   : > { %v1753_v35 = vpack.c.bf16 %v1137_v1, %v1136_v61  ;;  %v825_v39 = vsub.f32 1.0, %v793_v14  ;;  %v1042_v40 = vsub.f32 %v2492_v26, %v2690_v24  ;;  %v1043_v43 = vsub.f32 %v2494_v27, %v2690_v24 }
  0xe0   : > { %v1755_v12 = vpack.c.bf16 %v1121_v31, %v1120_v21  ;;  %v1745_v16 = vpack.c.bf16 %v873_v32, %v872_v4  ;;  %v856_v44 = vmax.f32 %v824_v33, 0.0  ;;  %v1026_v45 = vsub.f32 %v2497_v29, %v2690_v24 }
  0xe1   : > { %1754 = vmatprep.subr.bf16.mxu0 %v1753_v35  ;;  %v857_v5 = vmax.f32 %v825_v39, 0.0  ;;  %v1074_v46 = vand.u32 2147483647, %v1042_v40  ;;  %v1075_v48 = vand.u32 2147483647, %v1043_v43  ;;  %v1027_v49 = vsub.f32 %v2511_v36, %v2690_v24 }
  0xe2   : > { %1756 = vmatpush3.bf16.msra.mxu0 %v1755_v12  ;;  %1746 = vmatprep.subr.bf16.mxu1 %v1745_v16  ;;  %v1058_v22 = vand.u32 2147483647, %v1026_v45  ;;  %v778_v26 = vsub.f32 %v2662_v54, %v2516_v41  ;;  %v779_v27 = vsub.f32 %v2665_v57, %v2516_v41  ;;  %v762_v51 = vsub.f32 %v2672_v0, %v2516_v41 }
  0xe3   : > { %v1747_v29 = vpack.c.bf16 %v857_v5, %v856_v44  ;;  %v1106_v23 = vsub.f32 1.0, %v1074_v46  ;;  %v1107_v52 = vsub.f32 1.0, %v1075_v48  ;;  %v1059_v18 = vand.u32 2147483647, %v1027_v49 }
  0xe4   : > { %v1090_v53 = vsub.f32 1.0, %v1058_v22  ;;  %v810_v55 = vand.u32 2147483647, %v778_v26  ;;  %v811_v25 = vand.u32 2147483647, %v779_v27  ;;  %v763_v36 = vsub.f32 %v2678_v11, %v2516_v41 }
  0xe5   : > { %1748 = vmatpush3.bf16.msra.mxu1 %v1747_v29  ;;  %v1138_v56 = vmax.f32 %v1106_v23, 0.0  ;;  %v1139_v58 = vmax.f32 %v1107_v52, 0.0  ;;  %v1091_v59 = vsub.f32 1.0, %v1059_v18  ;;  %v794_v60 = vand.u32 2147483647, %v762_v51 }
  0xe6   : > { %v1122_v61 = vmax.f32 %v1090_v53, 0.0  ;;  %v842_v1 = vsub.f32 1.0, %v810_v55  ;;  %v843_v4 = vsub.f32 1.0, %v811_v25  ;;  %v795_v14 = vand.u32 2147483647, %v763_v36 }
  0xe7   : > { %v1757_v21 = vpack.c.bf16 %v1139_v58, %v1138_v56  ;;  %v1123_v31 = vmax.f32 %v1091_v59, 0.0  ;;  %v826_v32 = vsub.f32 1.0, %v794_v60  ;;  %v1044_v33 = vsub.f32 %v2523_v8, %v2690_v24 }
  0xe8   : > { %v874_v35 = vmax.f32 %v842_v1, 0.0  ;;  %v875_v39 = vmax.f32 %v843_v4, 0.0  ;;  %v827_v40 = vsub.f32 1.0, %v795_v14  ;;  %v1045_v41 = vsub.f32 %v2525_v9, %v2690_v24 }
  0xe9   : > { %1758 = vmatprep.subr.bf16.mxu0 %v1757_v21  ;;  %v1759_v43 = vpack.c.bf16 %v1123_v31, %v1122_v61  ;;  %v858_v12 = vmax.f32 %v826_v32, 0.0  ;;  %v1076_v16 = vand.u32 2147483647, %v1044_v33  ;;  %v1028_v44 = vsub.f32 %v2530_v15, %v2690_v24 }
  0xea   : > { %v1749_v45 = vpack.c.bf16 %v875_v39, %v874_v35  ;;  %v859_v5 = vmax.f32 %v827_v40, 0.0  ;;  %v1077_v46 = vand.u32 2147483647, %v1045_v41  ;;  %v1029_v48 = vsub.f32 %v2540_v28, %v2690_v24 }
  0xeb   : > { %1760 = vmatpush3.bf16.msra.mxu0 %v1759_v43  ;;  %v1108_v8 = vsub.f32 1.0, %v1076_v16  ;;  %v1060_v49 = vand.u32 2147483647, %v1028_v44  ;;  %v1046_v22 = vsub.f32 %v2550_v63, %v2690_v24  ;;  %v1047_v9 = vsub.f32 %v2553_v2, %v2690_v24 }
  0xec   : > { %1750 = vmatprep.subr.bf16.mxu1 %v1749_v45  ;;  %v1751_v26 = vpack.c.bf16 %v859_v5, %v858_v12  ;;  %v1109_v27 = vsub.f32 1.0, %v1077_v46  ;;  %v1061_v51 = vand.u32 2147483647, %v1029_v48  ;;  %v1030_v15 = vsub.f32 %v2560_v13, %v2690_v24 }
  0xed   : > { %v1140_v29 = vmax.f32 %v1108_v8, 0.0  ;;  %v1092_v23 = vsub.f32 1.0, %v1060_v49  ;;  %v1078_v52 = vand.u32 2147483647, %v1046_v22  ;;  %v1079_v28 = vand.u32 2147483647, %v1047_v9 }
  0xee   : > { %1752 = vmatpush3.bf16.msra.mxu1 %v1751_v26  ;;  %v1141_v18 = vmax.f32 %v1109_v27, 0.0  ;;  %v1093_v53 = vsub.f32 1.0, %v1061_v51  ;;  %v1031_v63 = vsub.f32 %v2566_v19, %v2690_v24  ;;  %v1062_v55 = vand.u32 2147483647, %v1030_v15 }
  0xef   : > { %v1124_v25 = vmax.f32 %v1092_v23, 0.0  ;;  %v1110_v2 = vsub.f32 1.0, %v1078_v52  ;;  %v1111_v36 = vsub.f32 1.0, %v1079_v28  ;;  %v1048_v56 = vsub.f32 %v2578_v62, %v2690_v24 }
  0xf0   : > { %v1761_v58 = vpack.c.bf16 %v1141_v18, %v1140_v29  ;;  %v1125_v59 = vmax.f32 %v1093_v53, 0.0  ;;  %v1063_v13 = vand.u32 2147483647, %v1031_v63  ;;  %v1094_v60 = vsub.f32 1.0, %v1062_v55 }
  0xf1   : > { %954 = vmatmul.mubr.f32.vlgmr.msra.gmra.mrb[0].mxu1 %v2465_v10  ;;  %v1142_v61 = vmax.f32 %v1110_v2, 0.0  ;;  %v1143_v1 = vmax.f32 %v1111_v36, 0.0  ;;  %v1049_v4 = vsub.f32 %v2581_v3, %v2690_v24  ;;  %v1080_v14 = vand.u32 2147483647, %v1048_v56 }
  0xf2   : > { %1762 = vmatprep.subr.bf16.mxu0 %v1761_v58  ;;  %v1763_v19 = vpack.c.bf16 %v1125_v59, %v1124_v25  ;;  %v1095_v21 = vsub.f32 1.0, %v1063_v13  ;;  %v1126_v31 = vmax.f32 %v1094_v60, 0.0  ;;  %v1032_v32 = vsub.f32 %v2588_v17, %v2690_v24  ;;  %v1574_v2 = vld.sshfl [vmem:[%s2450_s30 + $0x8] sm:$0x33 pattern:$0x76325410] }
  0xf3   : > { %v1765_v62 = vpack.c.bf16 %v1143_v1, %v1142_v61  ;;  %v1081_v33 = vand.u32 2147483647, %v1049_v4  ;;  %v1112_v35 = vsub.f32 1.0, %v1080_v14  ;;  %v1033_v39 = vsub.f32 %v2594_v30, %v2690_v24 }
  0xf4   : > { %1764 = vmatpush3.bf16.msra.mxu0 %v1763_v19  ;;  %v1127_v10 = vmax.f32 %v1095_v21, 0.0  ;;  %v1064_v40 = vand.u32 2147483647, %v1032_v32  ;;  %v1050_v3 = vsub.f32 %v2606_v6, %v2690_v24  ;;  %v1051_v41 = vsub.f32 %v2609_v20, %v2690_v24 }
  0xf5   : > { %1766 = vmatprep.subr.bf16.mxu0 %v1765_v62  ;;  %v1113_v43 = vsub.f32 1.0, %v1081_v33  ;;  %v1144_v12 = vmax.f32 %v1112_v35, 0.0  ;;  %v1065_v16 = vand.u32 2147483647, %v1033_v39  ;;  %v1034_v17 = vsub.f32 %v2616_v34, %v2690_v24 }
  0xf6   : > { %v1767_v44 = vpack.c.bf16 %v1127_v10, %v1126_v31  ;;  %v1096_v45 = vsub.f32 1.0, %v1064_v40  ;;  %v1082_v5 = vand.u32 2147483647, %v1050_v3  ;;  %v1083_v30 = vand.u32 2147483647, %v1051_v41 }
  0xf7   : > { %v1145_v46 = vmax.f32 %v1113_v43, 0.0  ;;  %v1097_v48 = vsub.f32 1.0, %v1065_v16  ;;  %v1035_v8 = vsub.f32 %v2622_v38, %v2690_v24  ;;  %v1066_v6 = vand.u32 2147483647, %v1034_v17  ;;  %v1894_v16 = vld [vmem:[%s2443_s1] sm:$0xf] }
  0xf8   : > { %1768 = vmatpush3.bf16.msra.mxu0 %v1767_v44  ;;  %v1128_v49 = vmax.f32 %v1096_v45, 0.0  ;;  %v1114_v20 = vsub.f32 1.0, %v1082_v5  ;;  %v1115_v22 = vsub.f32 1.0, %v1083_v30  ;;  %v1052_v9 = vsub.f32 %v2634_v37, %v2690_v24  ;;  %v2776_v17 = vld [vmem:[#allocation2 + $0x8] sm:$0xf] }
  0xf9   : > { %v1769_v26 = vpack.c.bf16 %v1145_v46, %v1144_v12  ;;  %v1129_v27 = vmax.f32 %v1097_v48, 0.0  ;;  %v1067_v34 = vand.u32 2147483647, %v1035_v8  ;;  %v1098_v51 = vsub.f32 1.0, %v1066_v6  ;;  %v1896_v30 = vld [vmem:[#allocation2] sm:$0xf] }
  0xfa   : > { %v1146_v15 = vmax.f32 %v1114_v20, 0.0  ;;  %v1147_v29 = vmax.f32 %v1115_v22, 0.0  ;;  %v1053_v23 = vsub.f32 %v2637_v42, %v2690_v24  ;;  %v1084_v52 = vand.u32 2147483647, %v1052_v9 }
  0xfb   : > { %1770 = vmatprep.subr.bf16.mxu0 %v1769_v26  ;;  %v1771_v38 = vpack.c.bf16 %v1129_v27, %v1128_v49  ;;  %v1099_v28 = vsub.f32 1.0, %v1067_v34  ;;  %v1130_v18 = vmax.f32 %v1098_v51, 0.0  ;;  %v1036_v53 = vsub.f32 %v2644_v47, %v2690_v24 }
  0xfc   : > { %v1773_v63 = vpack.c.bf16 %v1147_v29, %v1146_v15  ;;  %v1085_v37 = vand.u32 2147483647, %v1053_v23  ;;  %v1116_v55 = vsub.f32 1.0, %v1084_v52  ;;  %v1037_v25 = vsub.f32 %v2650_v50, %v2690_v24 }
  0xfd   : > { %1772 = vmatpush3.bf16.msra.mxu0 %v1771_v38  ;;  %v1131_v36 = vmax.f32 %v1099_v28, 0.0  ;;  %v1068_v56 = vand.u32 2147483647, %v1036_v53  ;;  %v1054_v42 = vsub.f32 %v2662_v54, %v2690_v24  ;;  %v1055_v58 = vsub.f32 %v2665_v57, %v2690_v24 }
  0xfe   : > { %1774 = vmatprep.subr.bf16.mxu0 %v1773_v63  ;;  %v1117_v59 = vsub.f32 1.0, %v1085_v37  ;;  %v1148_v13 = vmax.f32 %v1116_v55, 0.0  ;;  %v1069_v47 = vand.u32 2147483647, %v1037_v25  ;;  %v1038_v60 = vsub.f32 %v2672_v0, %v2690_v24  ;;  %v1897_v25 = vld [vmem:[#allocation2 + $0x4] sm:$0xf] }
  0xff   : > { %v1775_v61 = vpack.c.bf16 %v1131_v36, %v1130_v18  ;;  %v1100_v1 = vsub.f32 1.0, %v1068_v56  ;;  %v1086_v50 = vand.u32 2147483647, %v1054_v42  ;;  %v1087_v4 = vand.u32 2147483647, %v1055_v58 }
 0x100   : > { %v1149_v14 = vmax.f32 %v1117_v59, 0.0  ;;  %v1101_v19 = vsub.f32 1.0, %v1069_v47  ;;  %v1039_v21 = vsub.f32 %v2678_v11, %v2690_v24  ;;  %v1070_v54 = vand.u32 2147483647, %v1038_v60  ;;  %v717_v59 = vld [vmem:[#allocation8] sm:$0x1] }
 0x101   : > { %1776 = vmatpush3.bf16.msra.mxu0 %v1775_v61  ;;  %v1132_v31 = vmax.f32 %v1100_v1, 0.0  ;;  %v1118_v57 = vsub.f32 1.0, %v1086_v50  ;;  %v1119_v32 = vsub.f32 1.0, %v1087_v4  ;;  %v1162_v62 = vcombine.high %v1574_v2, %v1574_v2 }
 0x102   : > { %v1777_v33 = vpack.c.bf16 %v1149_v14, %v1148_v13  ;;  %v1133_v35 = vmax.f32 %v1101_v19, 0.0  ;;  %v1071_v39 = vand.u32 2147483647, %v1039_v21  ;;  %v1102_v0 = vsub.f32 1.0, %v1070_v54  ;;  %v720_v54 = vld [vmem:[#allocation9] sm:$0x1] }
 0x103   : > { %v1150_v10 = vmax.f32 %v1118_v57, 0.0  ;;  %v1151_v40 = vmax.f32 %v1119_v32, 0.0  ;;  %1229 = vmatprep.mubr.f32.mxu0 %v1162_v62  ;;  %v2779_v44 = vmul.f32 %v2776_v17, %v1894_v16  ;;  %v2784_v45 = vrot.slane %v1894_v16, 1 }
 0x104   : > { %1778 = vmatprep.subr.bf16.mxu0 %v1777_v33  ;;  %v1779_v3 = vpack.c.bf16 %v1133_v35, %v1132_v31  ;;  %v1103_v41 = vsub.f32 1.0, %v1071_v39  ;;  %v1134_v43 = vmax.f32 %v1102_v0, 0.0  ;;  %v2786_v5 = vrot.slane %v1894_v16, 7 }
 0x105   : > { %v1781_v11 = vpack.c.bf16 %v1151_v40, %v1150_v10  ;;  %1294 = vst [vmem:[%s388_s11 - $0x1] sm:$0x2] %v2779_v44  ;;  %v688_v46 = vmul.f32 %v1896_v30, %v2784_v45  ;;  %v463_v48 = vmul.f32 %v1896_v30, %v1894_v16  ;;  %v2196_v34 = vmov 1966171168  }
 0x106   : > { %1780 = vmatpush3.bf16.msra.mxu0 %v1779_v3  ;;  %v1135_v24 = vmax.f32 %v1103_v41, 0.0  ;;  %v685_v8 = vmul.f32 %v1896_v30, %v2786_v5  ;;  %v723_v51 = vunpack.c.l.s4 %v2196_v34  ;;  %v964_v36 = vmul.f32 %v1897_v25, %v2784_v45 }
 0x107   : > { %1782 = vmatprep.subr.bf16.mxu0 %v1781_v11  ;;  %v690_v6 = vrot.slane %v688_v46, 7  ;;  %v679_v49 = vrot.slane %v463_v48, 1  ;;  %v963_v61 = vmul.f32 %v1897_v25, %v2786_v5  ;;  %v1236_v34 = vrot.slane %v2779_v44, 1 }
 0x108   : > { %v1783_v12 = vpack.c.bf16 %v1135_v24, %v1134_v43  ;;  %v724_v18 = vunpack.c.0.s8 %v723_v51  ;;  %v966_v1 = vrot.slane %v964_v36, 7 }
 0x109   : > { %v692_v20 = vadd.f32 %v690_v6, %v685_v8  ;;  %v681_v22 = vsub.f32 %v463_v48, %v679_v49 }
 0x10a   : > { %1784 = vmatpush3.bf16.msra.mxu0 %v1783_v12  ;;  %v2792_v58 = vsub.s32 %v724_v18, %v2460_v7  ;;  %v968_v21 = vadd.f32 %v966_v1, %v963_v61 }
 0x10b   : > { %v698_v26 = vrot.slane %v692_v20, 2  ;;  %v708_v27 = vrot.slane %v692_v20, 3  ;;  %v694_v23 = vrot.slane %v681_v22, 2  ;;  %v705_v52 = vrot.slane %v681_v22, 1 }
 0x10c   : > { %v974_v62 = vrot.slane %v968_v21, 2  ;;  %v984_v35 = vrot.slane %v968_v21, 3  ;;  %v1240_v20 = vmul.f32 %v2776_v17, %v2784_v45 }
 0x10d   : > { %1230 = vmatmul.mubr.f32.vlgmr.msra.gmra.mrb[2].mxu0 %v1574_v2  ;;  %v743_v2 = vmul.f32 %v1897_v25, %v1894_v16 }
 0x10f   : > { %v960_v60 = vrot.slane %v743_v2, 1 }
 0x111   : > { %v962_v19 = vsub.f32 %v743_v2, %v960_v60 }
 0x113   : > { %v970_v32 = vrot.slane %v962_v19, 2  ;;  %v981_v33 = vrot.slane %v962_v19, 1 }
 0x1b1   : > { %v1616_v9 = vpop.f32.mrb[0].mxu0 }
 0x1b2   : > { %v1617_v15 = vpop.f32.mrb[1].mxu0 }
 0x1b3   : > { %v1618_v29 = vadd.f32 %v1617_v15, %v1616_v9  ;;  %v1238_v15 = vsub.f32 %v2779_v44, %v1236_v34 }
 0x1b5   : > { %v700_v38 = vmul.f32 %v1618_v29, %v698_v26  ;;  %v710_v28 = vmul.f32 %v1618_v29, %v708_v27  ;;  %v696_v53 = vmul.f32 %v1618_v29, %v694_v23  ;;  %v707_v37 = vmul.f32 %v1618_v29, %v705_v52 }
 0x1b6   : > { %v1239_v26 = vmul.f32 %v2776_v17, %v2786_v5  ;;  %v1242_v27 = vrot.slane %v1240_v20, 7  ;;  %v1257_v18 = vrot.slane %v1238_v15, 1 }
 0x1b7   : > { %v702_v63 = vrot.slane %v700_v38, 1  ;;  %v712_v55 = vrot.slane %v710_v28, 7  ;;  %v1246_v28 = vrot.slane %v1238_v15, 2 }
 0x1b8   : > { %v1244_v51 = vadd.f32 %v1242_v27, %v1239_v26 }
 0x1b9   : > { %v704_v56 = vsub.f32 %v696_v53, %v702_v63  ;;  %v714_v42 = vadd.f32 %v712_v55, %v707_v37 }
 0x1ba   : > { %v1250_v23 = vrot.slane %v1244_v51, 2  ;;  %v1260_v52 = vrot.slane %v1244_v51, 3 }
 0x1bb   : > { %v715_v13 = vmul.f32 %v704_v56, %v679_v49  ;;  %v716_v47 = vmul.f32 %v714_v42, %v463_v48 }
 0x1bd   : > { %v728_v50 = vrot.slane %v716_v47, %v2792_v58  ;;  %v718_v4 = vadd.f32 %v717_v59, %v715_v13 }
 0x1bf   : > { %719 = vst [vmem:[#allocation8] sm:$0x1] %v718_v4  ;;  %v729_v14 = vcombine.high %v728_v50, %v728_v50 }
 0x1c1   : > { %v736_v31 = vrot.slane %v729_v14, %v2792_v58 }
 0x1c3   : > { %v738_v57 = vadd.f32 %v736_v31, %v720_v54 }
 0x1c4   : > { %v1651_v7 = vpop.f32.mrb[0].mxu1 }
 0x1c5   : > { %v1652_v39 = vpop.f32.mrb[1].mxu1  ;;  %739 = vst [vmem:[#allocation9] sm:$0x1] %v738_v57 }
 0x1c6   : > { %v1653_v0 = vadd.f32 %v1652_v39, %v1651_v7  ;;  %v993_v16 = vld [vmem:[#allocation8] sm:$0x1] }
 0x1c8   : > { %v972_v10 = vmul.f32 %v1653_v0, %v970_v32  ;;  %v976_v40 = vmul.f32 %v1653_v0, %v974_v62  ;;  %v983_v3 = vmul.f32 %v1653_v0, %v981_v33  ;;  %v986_v41 = vmul.f32 %v1653_v0, %v984_v35 }
 0x1ca   : > { %v978_v43 = vrot.slane %v976_v40, 1  ;;  %v988_v11 = vrot.slane %v986_v41, 7 }
 0x1cc   : > { %v980_v24 = vsub.f32 %v972_v10, %v978_v43  ;;  %v990_v12 = vadd.f32 %v988_v11, %v983_v3  ;;  %v996_v49 = vld [vmem:[#allocation9] sm:$0x1] }
 0x1ce   : > { %v992_v30 = vmul.f32 %v990_v12, %v743_v2  ;;  %v991_v46 = vmul.f32 %v980_v24, %v960_v60 }
 0x1d0   : > { %v994_v48 = vadd.f32 %v993_v16, %v991_v46  ;;  %v1004_v8 = vrot.slane %v992_v30, %v2792_v58 }
 0x1d2   : > { %995 = vst [vmem:[#allocation8] sm:$0x1] %v994_v48  ;;  %v1005_v6 = vcombine.high %v1004_v8, %v1004_v8 }
 0x1d4   : > { %v1012_v22 = vrot.slane %v1005_v6, %v2792_v58 }
 0x1d6   : > { %v1014_v9 = vadd.f32 %v1012_v22, %v996_v49 }
 0x1d8   : > { %1015 = vst [vmem:[#allocation9] sm:$0x1] %v1014_v9 }
 0x1d9   : > { %v1269_v42 = vld [vmem:[#allocation8] sm:$0x1] }
 0x1e0   : > { %v1686_v29 = vpop.f32.mrb[2].mxu0 }
 0x1e1   : > { %v1687_v38 = vpop.f32.mrb[3].mxu0 }
 0x1e2   : > { %v1688_v45 = vadd.f32 %v1687_v38, %v1686_v29 }
 0x1e4   : > { %v1252_v53 = vmul.f32 %v1688_v45, %v1250_v23  ;;  %v1262_v63 = vmul.f32 %v1688_v45, %v1260_v52  ;;  %v1248_v17 = vmul.f32 %v1688_v45, %v1246_v28  ;;  %v1259_v37 = vmul.f32 %v1688_v45, %v1257_v18 }
 0x1e6   : > { %v1254_v5 = vrot.slane %v1252_v53, 1  ;;  %v1264_v55 = vrot.slane %v1262_v63, 7 }
 0x1e8   : > { %v1256_v25 = vsub.f32 %v1248_v17, %v1254_v5  ;;  %v1266_v2 = vadd.f32 %v1264_v55, %v1259_v37 }
 0x1ea   : > { %v1267_v36 = vmul.f32 %v1256_v25, %v1236_v34  ;;  %v1268_v56 = vmul.f32 %v1266_v2, %v2779_v44 }
 0x1ec   : > { %v1270_v59 = vadd.f32 %v1269_v42, %v1267_v36  ;;  %1292 = vst [vmem:[%s376_s23] sm:$0x1] %v1267_v36  ;;  %v1280_v44 = vrot.slane %v1268_v56, %v2792_v58  ;;  %1293 = vst [vmem:[%s382_s14 - $0x1] sm:$0x2] %v1268_v56  ;;  %s1992_s14 = scalar_lea.vmem %s2806_s18, 32 }
 0x1ed   : > { %p1994_p11 = scmp.lt.s32.totalorder %s1992_s14, %s1986_s21 }
 0x1ee   : > { %1271 = vst [vmem:[#allocation8] sm:$0x1] %v1270_v59  ;;  %v1281_v13 = vcombine.high %v1280_v44, %v1280_v44 }
 0x1ef   : > { %p1995_p2 = por %p1994_p11, %p1993_p5 }
 0x1f1   : > { %p1996_p8 = pnand %p1995_p2, %p1989_p10 }
 0x1f3   : > { %1999 = shalt.err (!%p1996_p8)
}
 0x1f4   : > { %s2000_s22 = scalar_lea.hbm %s2996_s3, 16  ;;  %p3027_p4 = pmov %p3026_p3 }
 0x1f5   : > { %p2001_p0 = scmp.ne.s32.totalorder %s2996_s3, %s2000_s22  ;;  %p2006_p12 = scmp.lt.u32.totalorder %s2000_s22, %s2996_s3 }
 0x1f7   : > { %p2002_p6 = pnand %p2001_p0, %p3027_p4 }
 0x1f9   : > { %p2003_p7 = pneg %p2002_p6 }
 0x1fb   : > { %p2008_p9 = pnand %p2006_p12, %p2003_p7 }
 0x1fd   : > { %2011 = shalt.err (!%p2008_p9)
}
 0x1fe   : > { %p3028_p1 = pmov %p3026_p3  ;;  %s3029_s1 = sand.u32 1, %s2335_s12  }
 0x1ff   : > { %s2869_s30 = scalar_lea.sflag [#allocation4], %s3029_s1  ;;  %s2012_s15 = scalar_lea.vmem %s2822_s9, 16 }
 0x200   : > { %1797 = dma.vmem_to_hbm [thread:$0]  (%p3028_p1), %s2806_s18, 16, %s2996_s3, [#allocation4]  }
 0x201   : > { %p2013_p3 = scmp.ne.s32.totalorder %s2822_s9, %s2012_s15  ;;  %p3030_p13 = scmp.ne.s32.totalorder %s3016_s17, 0 }
 0x202   : > { %s2199_s8 = smov [#allocation11]  }
 0x203   : > { %p2014_p10 = pnand %p2013_p3, %p3030_p13  ;;  %s2016_s22 = sshll.u32 %s2199_s8, 4  ;;  %s2017_s22 = int_to_ptr.vmem [resolvable:$false] %s2016_s22 }
 0x204   : > { %s2018_s11 = scalar_lea.vmem %s2017_s22, 32  ;;  %p2019_p11 = scmp.lt.s32.totalorder %s2822_s9, %s2017_s22 }
 0x205   : > { %p2015_p5 = pneg %p2014_p10  ;;  %p2020_p2 = scmp.lt.s32.totalorder %s2018_s11, %s2012_s15 }
 0x207   : > { %p2021_p8 = por %p2020_p2, %p2019_p11 }
 0x209   : > { %p2022_p0 = pnand %p2021_p8, %p2015_p5 }
 0x20b   : > { %2025 = shalt.err (!%p2022_p0)
}
 0x20c   : > { %s2026_s18 = scalar_lea.hbm %s2816_s27, 16  ;;  %s2030_s14 = scalar_lea.hbm %s2998_s5, 64 }
 0x20d   : > { %p2027_p4 = scmp.ne.s32.totalorder %s2816_s27, %s2026_s18  ;;  %p2031_p12 = scmp.lt.u32.totalorder %s2816_s27, %s2998_s5 }
 0x20e   : > { %p2032_p9 = scmp.lt.u32.totalorder %s2030_s14, %s2026_s18  ;;  %p2034_p3 = scmp.lt.u32.totalorder %s2026_s18, %s2816_s27 }
 0x20f   : > { %p2028_p6 = pnand %p2027_p4, %p3030_p13 }
 0x210   : > { %p2033_p1 = por %p2032_p9, %p2031_p12 }
 0x211   : > { %p2029_p7 = pneg %p2028_p6 }
 0x212   : > { %p2035_p10 = por %p2034_p3, %p2033_p1 }
 0x214   : > { %p2036_p5 = pnand %p2035_p10, %p2029_p7 }
 0x216   : > { %2039 = shalt.err (!%p2036_p5)
}
 0x217   : > { %1800 = dma.vmem_to_hbm [thread:$0]  (%p3030_p13), %s2822_s9, 16, %s2816_s27, %s2869_s30   ;;  %v1288_v47 = vrot.slane %v1281_v13, %v2792_v58 }
 0x218   : > { %s2040_s15 = scalar_lea.vmem %s2832_s19, 16  ;;  %s2200_s22 = smov [#allocation12]  }
 0x219   : > { %p2041_p11 = scmp.ne.s32.totalorder %s2832_s19, %s2040_s15  ;;  %s2044_s11 = sshll.u32 %s2200_s22, 4  ;;  %s2045_s11 = int_to_ptr.vmem [resolvable:$false] %s2044_s11 }
 0x21a   : > { %s2046_s18 = scalar_lea.vmem %s2045_s11, 32  ;;  %p2047_p0 = scmp.lt.s32.totalorder %s2832_s19, %s2045_s11 }
 0x21b   : > { %p2042_p2 = pnand %p2041_p11, %p3030_p13  ;;  %p2048_p4 = scmp.lt.s32.totalorder %s2046_s18, %s2040_s15 }
 0x21d   : > { %p2043_p8 = pneg %p2042_p2  ;;  %p2049_p6 = por %p2048_p4, %p2047_p0 }
 0x21f   : > { %p2050_p7 = pnand %p2049_p6, %p2043_p8 }
 0x221   : > { %2053 = shalt.err (!%p2050_p7)
}
 0x222   : > { %s2054_s9 = scalar_lea.hbm %s2830_s28, 16  ;;  %s2058_s21 = scalar_lea.hbm %s2999_s6, 64 }
 0x223   : > { %p2055_p12 = scmp.ne.s32.totalorder %s2830_s28, %s2054_s9  ;;  %p2059_p3 = scmp.lt.u32.totalorder %s2830_s28, %s2999_s6 }
 0x224   : > { %p2060_p10 = scmp.lt.u32.totalorder %s2058_s21, %s2054_s9  ;;  %p2062_p11 = scmp.lt.u32.totalorder %s2054_s9, %s2830_s28 }
 0x225   : > { %p2056_p9 = pnand %p2055_p12, %p3030_p13 }
 0x226   : > { %p2061_p5 = por %p2060_p10, %p2059_p3 }
 0x227   : > { %p2057_p1 = pneg %p2056_p9 }
 0x228   : > { %p2063_p2 = por %p2062_p11, %p2061_p5 }
 0x22a   : > { %p2064_p8 = pnand %p2063_p2, %p2057_p1 }
 0x22c   : > { %2067 = shalt.err (!%p2064_p8)
}
 0x22d   : > { %1801 = dma.vmem_to_hbm [thread:$0]  (%p3030_p13), %s2832_s19, 16, %s2830_s28, %s2869_s30   ;;  %v1272_v58 = vld [vmem:[#allocation9] sm:$0x1] }
 0x22e   : > { %v1290_v60 = vadd.f32 %v1288_v47, %v1272_v58  ;;  %s2068_s8 = scalar_lea.vmem %s2841_s24, 16  ;;  %s2201_s15 = smov [#allocation13]  }
 0x22f   : > { %p2069_p0 = scmp.ne.s32.totalorder %s2841_s24, %s2068_s8  ;;  %s2072_s22 = sshll.u32 %s2201_s15, 4  ;;  %s2073_s22 = int_to_ptr.vmem [resolvable:$false] %s2072_s22 }
 0x230   : > { %s2074_s11 = scalar_lea.vmem %s2073_s22, 32  ;;  %p2075_p7 = scmp.lt.s32.totalorder %s2841_s24, %s2073_s22 }
 0x231   : > { %p2070_p4 = pnand %p2069_p0, %p3030_p13  ;;  %p2076_p12 = scmp.lt.s32.totalorder %s2074_s11, %s2068_s8 }
 0x233   : > { %p2071_p6 = pneg %p2070_p4  ;;  %p2077_p9 = por %p2076_p12, %p2075_p7 }
 0x235   : > { %p2078_p1 = pnand %p2077_p9, %p2071_p6 }
 0x237   : > { %2081 = shalt.err (!%p2078_p1)
}
 0x238   : > { %s2082_s19 = scalar_lea.hbm %s2839_s10, 16  ;;  %s2086_s9 = scalar_lea.hbm %s3000_s7, 64 }
 0x239   : > { %p2083_p3 = scmp.ne.s32.totalorder %s2839_s10, %s2082_s19  ;;  %p2087_p11 = scmp.lt.u32.totalorder %s2839_s10, %s3000_s7 }
 0x23a   : > { %p2088_p2 = scmp.lt.u32.totalorder %s2086_s9, %s2082_s19  ;;  %p2090_p0 = scmp.lt.u32.totalorder %s2082_s19, %s2839_s10 }
 0x23b   : > { %p2084_p10 = pnand %p2083_p3, %p3030_p13 }
 0x23c   : > { %p2089_p8 = por %p2088_p2, %p2087_p11 }
 0x23d   : > { %p2085_p5 = pneg %p2084_p10 }
 0x23e   : > { %p2091_p4 = por %p2090_p0, %p2089_p8 }
 0x240   : > { %p2092_p6 = pnand %p2091_p4, %p2085_p5 }
 0x242   : > { %2095 = shalt.err (!%p2092_p6)
}
 0x243   : > { %1802 = dma.vmem_to_hbm [thread:$0]  (%p3030_p13), %s2841_s24, 16, %s2839_s10, %s2869_s30   ;;  %1291 = vst [vmem:[#allocation9] sm:$0x1] %v1290_v60 }
 0x244   : > { %s2096_s21 = scalar_lea.vmem %s2834_s16, 16  ;;  %p3031_p12 = scmp.eq.s32.totalorder %s2335_s12, 3 }
 0x245   : > { %p2097_p7 = scmp.ne.s32.totalorder %s2834_s16, %s2096_s21  ;;  %s2102_s14 = scalar_lea.vmem %s2834_s16, 32 }
 0x246   : > { %p2103_p3 = scmp.lt.s32.totalorder %s2834_s16, %s2834_s16  ;;  %p2104_p10 = scmp.lt.s32.totalorder %s2102_s14, %s2096_s21 }
 0x247   : > { %p2098_p9 = pnand %p2097_p7, %p3031_p12 }
 0x248   : > { %p2105_p5 = por %p2104_p10, %p2103_p3 }
 0x249   : > { %p2099_p1 = pneg %p2098_p9 }
 0x24b   : > { %p2106_p11 = pnand %p2105_p5, %p2099_p1 }
 0x24d   : > { %2109 = shalt.err (!%p2106_p11)
}
 0x24e   : > { %s2110_s8 = scalar_lea.hbm %s2997_s4, 16  ;;  %p3032_p2 = pmov %p3031_p12 }
 0x24f   : > { %p2111_p13 = scmp.ne.s32.totalorder %s2997_s4, %s2110_s8  ;;  %p2116_p4 = scmp.lt.u32.totalorder %s2110_s8, %s2997_s4 }
 0x251   : > { %p2112_p8 = pnand %p2111_p13, %p3032_p2 }
 0x253   : > { %p2113_p0 = pneg %p2112_p8 }
 0x255   : > { %p2118_p6 = pnand %p2116_p4, %p2113_p0 }
 0x257   : > { %2121 = shalt.err (!%p2118_p6)
}
 0x258   : > { %p3033_p7 = pmov %p3032_p2  ;;  %p3034_p12 = pmov %p3032_p2 }
 0x25a   : > { %1799 = dma.vmem_to_hbm [thread:$0]  (%p3033_p7), %s2834_s16, 16, %s2997_s4, [#allocation10]  }
 0x25b   : > { %2155 = dma.done.wait (%p3034_p12), [#allocation4], 16   ;;  %p3035_p9 = pmov %p3032_p2 }
 0x25c   : > { %p3036_p1 = pmov %p3032_p2 }
 0x25d   : > { %2157 = vsyncadd (%p3035_p9), [#allocation4], 4294967280 }
 0x25e   : > { %2159 = dma.done.wait (%p3036_p1), [#allocation10], 16   ;;  %p3037_p3 = pmov %p3036_p1 }
 0x260   : > { %2161 = vsyncadd (%p3037_p3), [#allocation10], 4294967280 }
 0x261 PF: > { %p1838_p10 = scmp.ge.s32.totalorder %s2188_s29, 2  ;;  %s3038_s19 = sadd.s32 4294967294, %s2188_s29  }
 0x262   : > { %s1391_s28 = sand.u32 1, %s3038_s19   ;;  %p3039_p5 = scmp.ne.s32.totalorder %s3017_s20, 0 }
 0x263   : > { %s1392_s16 = scalar_lea.sflag [#allocation4], %s1391_s28 }
 0x264   : > { %p1822_p11 = pnand %p1838_p10, %p3039_p5 }
 0x266   : > { %2163 = dma.done.wait (!%p1822_p11), %s1392_s16, 48  }
 0x267   : > { %2165 = vsyncadd (!%p1822_p11), %s1392_s16, 4294967248  ;;  %s24_s29 = sadd.s32 1, %s2188_s29   ;;  %s3040_s27 = sld [smem:[#allocation19_spill]] }
 0x268   : > { %p21_p13 = scmp.ge.s32.totalorder %s24_s29, 6   ;;  %s3041_s28 = sld [smem:[#allocation20_spill]] }
 0x269   : > { %s3042_s24 = smov %s2172_s25  ;;  %s3043_s25 = smov %s2176_s26 }
 0x26a   : > { %s3044_s26 = smov %s2289_s13  ;;  %23 = sbr.rel (!%p21_p13) target bundleno = 9 (0x9), region = 149 }
 0x271   :  { %1412 = vsyncpa [#allocation3], 1 }
 0x272   :  { %1414 = vsyncpa [#allocation3 + $0x1], 1 }
 0x273   :  { %1415 = vsyncpa [#allocation6], 1 }
 0x274   :  { %1417 = vsyncpa [#allocation6 + $0x1], 1 }
 0x275   :  { %1418 = vsyncpa [#allocation4], 1 }
 0x276   :  { %1420 = vsyncpa [#allocation4 + $0x1], 1 }
 0x277   :  { %1421 = vsyncpa [#allocation10], 1 }

</bundles_post_ra>
